<compile_context>
chip_gen: v6e
topology: v6e:2x2x1
jax: 0.10.0
libtpu: 0.0.40
codegen_flags: <defaults>
</compile_context>

<pallas_src>
import functools
from math import sqrt

import jax
import jax.numpy as jnp
from jax.experimental import pallas as pl
from jax.experimental.pallas import tpu as pltpu

_MASK_VALUE = -0.7 * float(jnp.finfo(jnp.float32).max)   # exp() underflows to exactly 0.0


# ------------------------------- Pallas kernel ------------------------------- #

def _full_attention_kernel(q_ref, k_ref, v_ref, o_ref, a_ref,
                           m_ref, l_ref, acc_ref, mtile_ref, p_ref,
                           *, tl, tk, ns, mask_flag):
    """grid = (B, H, nl, ns); one (query-tile, key-tile) pair per grid step.

    Block shapes per step:
      q_ref : (1, 1, tl, E)  bf16 (softmax scale already folded in)
      k_ref : (1, 1, E, tk)  bf16 (contraction-major: S on lanes)
      v_ref : (1, 1, tk, D)  bf16
      o_ref : (1, 1, tl, D)  f32        (revisited across the key axis)
      a_ref : (1, 1, tl, S)  attn dtype (revisited across the key axis)
    Scratch (persist across grid steps):
      m_ref    : (tl, 1)       f32  running row max
      l_ref    : (tl, 1)       f32  running softmax denominator
      acc_ref  : (tl, D)       f32  unnormalized output accumulator
      mtile_ref: (ns, tl, 1)   f32  per-key-tile row maxima (for the deferred A rescale)
      p_ref    : (ns, tl, tk)  attn dtype, unnormalized exp(scores - tile max)
    """
    l_idx = pl.program_id(2)
    s_idx = pl.program_id(3)
    row0 = l_idx * tl
    col0 = s_idx * tk

    @pl.when(s_idx == 0)
    def _init():
        m_ref[...] = jnp.full_like(m_ref, _MASK_VALUE)
        l_ref[...] = jnp.zeros_like(l_ref)
        acc_ref[...] = jnp.zeros_like(acc_ref)

    def _compute():
        q = q_ref[0, 0]                       # (tl, E)
        k = k_ref[0, 0]                       # (E, tk)
        v = v_ref[0, 0]                       # (tk, D)
        s = jnp.dot(q, k, preferred_element_type=jnp.float32)   # (tl, tk) on the MXU
        if mask_flag:
            rows = row0 + jax.lax.broadcasted_iota(jnp.int32, s.shape, 0)
            cols = col0 + jax.lax.broadcasted_iota(jnp.int32, s.shape, 1)
            s = jnp.where(cols > rows, _MASK_VALUE, s)

        m_tile = jnp.max(s, axis=-1, keepdims=True)              # (tl, 1)
        e = jnp.exp(s - m_tile)                                  # values in (0, 1]
        m_old = m_ref[...]
        m_new = jnp.maximum(m_old, m_tile)
        alpha = jnp.exp(m_old - m_new)                           # rescale of old running state
        corr = jnp.exp(m_tile - m_new)                           # rescale of this tile

        l_ref[...] = alpha * l_ref[...] + corr * jnp.sum(e, axis=-1, keepdims=True)
        acc_ref[...] = alpha * acc_ref[...] + jnp.dot(
            (e * corr).astype(v.dtype), v, preferred_element_type=jnp.float32)
        m_ref[...] = m_new
        mtile_ref[s_idx] = m_tile
        p_ref[s_idx] = e.astype(p_ref.dtype)

    if mask_flag:
        # Key tiles entirely above the causal diagonal contribute exactly zero:
        # skip the matmul / exp and just record zeros for the deferred A write.
        fully_masked = col0 > row0 + (tl - 1)

        @pl.when(fully_masked)
        def _skip():
            mtile_ref[s_idx] = jnp.full((tl, 1), _MASK_VALUE, jnp.float32)
            p_ref[s_idx] = jnp.zeros((tl, tk), p_ref.dtype)

        @pl.when(jnp.logical_not(fully_masked))
        def _():
            _compute()
    else:
        _compute()

    @pl.when(s_idx == ns - 1)
    def _finalize():
        m_fin = m_ref[...]
        inv_l = pl.reciprocal(l_ref[...], approx=False)          # exact: A rows sum to 1
        o_ref[0, 0] = (acc_ref[...] * inv_l).astype(o_ref.dtype)
        # Deferred rescale of the stored exp tiles to the final row max / denominator.
        for j in range(ns):                                       # ns is static
            scale = jnp.exp(mtile_ref[j] - m_fin) * inv_l         # (tl, 1)
            blk = p_ref[j].astype(jnp.float32) * scale
            if ns == 1:
                a_ref[0, 0] = blk.astype(a_ref.dtype)
            else:
                a_ref[0, 0, :, j * tk:(j + 1) * tk] = blk.astype(a_ref.dtype)


# ------------------------- tile / VMEM sizing helpers ------------------------- #

def _vmem_capacity_bytes():
    try:
        return int(pltpu.get_tpu_info().vmem_capacity_bytes)
    except Exception:            # conservative fallback = v7x (64 MiB per TensorCore)
        return 64 * 1024 * 1024


def _vmem_footprint(tl, tk, S, E, D, a_bytes):
    ns = S // tk
    blocks = (2 * tl * E * 2           # Q  (double-buffered bf16)
              + 2 * E * tk * 2         # K
              + 2 * tk * D * 2         # V
              + 2 * tl * D * 4         # O  (f32)
              + 2 * tl * S * a_bytes)  # A  (resident across the key axis)
    scratch = (2 * tl * 4              # m, l
               + tl * D * 4            # acc
               + ns * tl * 512         # per-tile maxima ((tl,1) slices, lane-padded)
               + ns * tl * tk * a_bytes)  # unnormalized exp tiles
    temps = 4 * tl * tk * 4            # live f32 temporaries (scores / exp / select)
    return blocks + scratch + temps


def _choose_tiles(L, S, E, D, a_bytes, budget):
    """Largest tiles that fit the VMEM budget; whole-axis tiles are always legal."""
    tl_cands = [t for t in (512, 256, 128, 64, 32, 16, 8) if t <= L and L % t == 0]
    if L % 8 == 0 and L <= 512 and L not in tl_cands:
        tl_cands.insert(0, L)
    if not tl_cands:
        tl_cands = [L]                                   # L not a multiple of 8
    tk_cands = [S] + [t for t in (2048, 1024, 512, 256, 128) if t < S and S % t == 0]
    best = None
    for tl in tl_cands:                 # prefer big query tiles + full-S key residency
        for tk in tk_cands:
            fp = _vmem_footprint(tl, tk, S, E, D, a_bytes)
            if fp <= budget:
                return tl, tk, fp
            if best is None or fp < best[2]:
                best = (tl, tk, fp)
    return best


# --------------------------------- wrapper ----------------------------------- #

def full_attention(queries, keys, values, attn_mask=None, tau=None, delta=None, *,
                   mask_flag=True, scale=None, tile_l=None, tile_s=None,
                   attn_dtype=jnp.bfloat16):
    """Pallas FullAttention forward.

    queries:(B,L,H,E) keys:(B,S,H,E) values:(B,S,H,D).
    Returns (V:(B,L,H,D) float32, A:(B,H,L,S) `attn_dtype`), matching the PyTorch module.
    """
    B, L, H, E = queries.shape
    _, S, _, D = values.shape
    sc = scale if scale is not None else 1.0 / sqrt(E)

    if mask_flag:
        if attn_mask is not None:
            # TODO(synk): user-supplied attn_mask not implemented; only the default causal path.
            raise NotImplementedError("custom attn_mask is not supported; pass attn_mask=None")
        if L != S:
            raise ValueError("mask_flag=True (TriangularCausalMask) requires L == S")
    # TODO(synk): attention_dropout is the inference-mode identity (no in-kernel dropout).

    a_bytes = jnp.dtype(attn_dtype).itemsize
    cap = _vmem_capacity_bytes()
    budget = min(int(cap * 0.6), 96 * 1024 * 1024)

    auto_tl, auto_tk, _ = _choose_tiles(L, S, E, D, a_bytes, budget)
    tl = tile_l if (tile_l is not None and L % tile_l == 0 and
                    (tile_l % 8 == 0 or tile_l == L)) else auto_tl
    tk = tile_s if (tile_s is not None and S % tile_s == 0 and
                    (tile_s % 128 == 0 or tile_s == S)) else auto_tk
    nl, ns = L // tl, S // tk
    fp = _vmem_footprint(tl, tk, S, E, D, a_bytes)
    vmem_limit = int(min(cap - (8 << 20), max(budget, int(fp * 1.3))))

    # Layout staging — each is a single XLA pass fused with the bf16 cast:
    #   Q: (B,H,L,E) with the softmax scale folded in once.
    #   K: (B,H,E,S) contraction-major, so the QK^T RHS is lane-dense on the MXU.
    #   V: (B,H,S,D).
    qh = (queries.astype(jnp.float32) * jnp.float32(sc)).transpose(0, 2, 1, 3).astype(jnp.bfloat16)
    kh = keys.astype(jnp.bfloat16).transpose(0, 2, 3, 1)
    vh = values.astype(jnp.bfloat16).transpose(0, 2, 1, 3)

    kernel = functools.partial(_full_attention_kernel, tl=tl, tk=tk, ns=ns, mask_flag=mask_flag)

    o, a = pl.pallas_call(
        kernel,
        out_shape=(jax.ShapeDtypeStruct((B, H, L, D), jnp.float32),
                   jax.ShapeDtypeStruct((B, H, L, S), attn_dtype)),
        grid_spec=pltpu.PrefetchScalarGridSpec(
            num_scalar_prefetch=0,
            grid=(B, H, nl, ns),
            in_specs=[
                pl.BlockSpec((1, 1, tl, E), lambda b, h, l, s: (b, h, l, 0)),   # Q tile
                pl.BlockSpec((1, 1, E, tk), lambda b, h, l, s: (b, h, 0, s)),   # K tile
                pl.BlockSpec((1, 1, tk, D), lambda b, h, l, s: (b, h, s, 0)),   # V tile
            ],
            out_specs=(
                pl.BlockSpec((1, 1, tl, D), lambda b, h, l, s: (b, h, l, 0)),   # O (revisited over s)
                pl.BlockSpec((1, 1, tl, S), lambda b, h, l, s: (b, h, l, 0)),   # A (revisited over s)
            ),
            scratch_shapes=[
                pltpu.VMEM((tl, 1), jnp.float32),        # running max
                pltpu.VMEM((tl, 1), jnp.float32),        # running denominator
                pltpu.VMEM((tl, D), jnp.float32),        # output accumulator
                pltpu.VMEM((ns, tl, 1), jnp.float32),    # per-key-tile maxima
                pltpu.VMEM((ns, tl, tk), attn_dtype),    # unnormalized exp tiles
            ]),
        compiler_params=pltpu.CompilerParams(
            dimension_semantics=("parallel", "parallel", "arbitrary", "arbitrary"),
            vmem_limit_bytes=vmem_limit),
    )(qh, kh, vh)

    # (B,H,L,D) -> (B,L,H,D). TODO(synk): consumers that accept the (B,H,L,D)
    # layout directly can skip this (small) final XLA transpose pass over O.
    return o.transpose(0, 2, 1, 3), a


# -------------------------- plain-JAX reference ------------------------------ #

def full_attention_reference(queries, keys, values, mask_flag=True, scale=None):
    B, L, H, E = queries.shape
    _, S, _, D = values.shape
    sc = scale if scale is not None else 1.0 / sqrt(E)
    scores = jnp.einsum('blhe,bshe->bhls', queries, keys)
    if mask_flag:
        causal = jnp.triu(jnp.ones((L, S), bool), k=1)
        scores = jnp.where(causal[None, None], -jnp.inf, scores)
    a = jax.nn.softmax(sc * scores, axis=-1)
    v = jnp.einsum('bhls,bshd->blhd', a, values)
    return v, a


# ----------------------------------- main ------------------------------------ #

if __name__ == "__main__":
    key = jax.random.PRNGKey(0)
    kq, kk, kv = jax.random.split(key, 3)

    B, L, H, E = 2, 256, 4, 32          # small, but L == S == 256 exercises nl = ns = 2
    S, D = L, E                          # causal mask requires S == L

    queries = jax.random.normal(kq, (B, L, H, E), jnp.float32)
    keys_in = jax.random.normal(kk, (B, S, H, E), jnp.float32)
    values_in = jax.random.normal(kv, (B, S, H, D), jnp.float32)

    # Causal path (default TriangularCausalMask): multi key-tile + causal tile skipping.
    out, attn = full_attention(queries, keys_in, values_in, None, None, None,
                               mask_flag=True, scale=None, tile_l=128, tile_s=128)
    out = jax.block_until_ready(out)
    attn = jax.block_until_ready(attn)

    assert out.shape == (B, L, H, D), out.shape
    assert attn.shape == (B, H, L, S), attn.shape

    out_f = out.astype(jnp.float32)
    attn_f = attn.astype(jnp.float32)
    assert bool(jnp.all(jnp.isfinite(out_f)))
    assert bool(jnp.all(jnp.isfinite(attn_f)))

    # attention rows must sum to ~1 (bf16 A storage tolerance)
    row_sums = jnp.sum(attn_f, axis=-1)
    assert bool(jnp.all(jnp.abs(row_sums - 1.0) < 2e-2)), float(jnp.max(jnp.abs(row_sums - 1.0)))

    o_want, a_want = full_attention_reference(queries, keys_in, values_in, mask_flag=True)
    o_err = float(jnp.max(jnp.abs(out_f - o_want)))
    a_err = float(jnp.max(jnp.abs(attn_f - a_want)))
    assert o_err < 2e-1, o_err
    assert a_err < 5e-2, a_err

    # Unmasked path (mask_flag=False) with auto-chosen tiles (ns == 1 residency path).
    out2, attn2 = full_attention(queries, keys_in, values_in, None, mask_flag=False)
    out2 = jax.block_until_ready(out2)
    o_want2, _ = full_attention_reference(queries, keys_in, values_in, mask_flag=False)
    o_err2 = float(jnp.max(jnp.abs(out2.astype(jnp.float32) - o_want2)))
    assert o_err2 < 2e-1, o_err2

    print("KERNEL_OK")
</pallas_src>

<mosaic_0001>
module attributes {stable_mosaic.version = 11 : i64} {
  func.func @_full_attention_kernel(%arg0: i32, %arg1: i32, %arg2: i32, %arg3: i32, %arg4: memref<1x1x128x32xbf16, #tpu.memory_space<vmem>>, %arg5: memref<1x1x32x128xbf16, #tpu.memory_space<vmem>>, %arg6: memref<1x1x128x32xbf16, #tpu.memory_space<vmem>>, %arg7: memref<1x1x128x32xf32, #tpu.memory_space<vmem>>, %arg8: memref<1x1x128x256xbf16, #tpu.memory_space<vmem>>, %arg9: memref<128x1xf32, #tpu.memory_space<vmem>>, %arg10: memref<128x1xf32, #tpu.memory_space<vmem>>, %arg11: memref<128x32xf32, #tpu.memory_space<vmem>>, %arg12: memref<2x128x1xf32, #tpu.memory_space<vmem>>, %arg13: memref<2x128x128xbf16, #tpu.memory_space<vmem>>) attributes {dimension_semantics = [#tpu.dimension_semantics<parallel>, #tpu.dimension_semantics<parallel>, #tpu.dimension_semantics<arbitrary>, #tpu.dimension_semantics<arbitrary>], iteration_bounds = array<i64: 2, 4, 2, 2>, scalar_prefetch = 0 : i64, scratch_operands = 5 : i64, tpu.core_type = #tpu.core_type<tc>, window_params = [{transform_indices = @transform_0, window_bounds = array<i64: 1, 1, 128, 32>}, {transform_indices = @transform_1, window_bounds = array<i64: 1, 1, 32, 128>}, {transform_indices = @transform_2, window_bounds = array<i64: 1, 1, 128, 32>}, {transform_indices = @transform_3, window_bounds = array<i64: 1, 1, 128, 32>}, {transform_indices = @transform_4, window_bounds = array<i64: 1, 1, 128, 256>}]} {
    %c128_i32 = arith.constant 128 : i32
    %0 = arith.muli %arg2, %c128_i32 : i32
    %c128_i32_0 = arith.constant 128 : i32
    %1 = arith.muli %arg3, %c128_i32_0 : i32
    %c0_i32 = arith.constant 0 : i32
    %2 = arith.cmpi eq, %arg3, %c0_i32 : i32
    %3 = arith.extui %2 : i1 to i32
    %c0_i32_1 = arith.constant 0 : i32
    %4 = arith.cmpi ne, %3, %c0_i32_1 : i32
    scf.if %4 {
      %cst = arith.constant -2.38197633E+38 : f32
      %15 = vector.broadcast %cst : f32 to vector<128x1xf32>
      %c0 = arith.constant 0 : index
      %c0_5 = arith.constant 0 : index
      %16 = vector.load %arg9[%c0, %c0_5] : memref<128x1xf32, #tpu.memory_space<vmem>>, vector<128x1xf32>
      tpu.vector_store %arg9[%c0, %c0_5], %15 {strides = array<i32>} : memref<128x1xf32, #tpu.memory_space<vmem>>, vector<128x1xf32>,
      %cst_6 = arith.constant 0.000000e+00 : f32
      %17 = vector.broadcast %cst_6 : f32 to vector<128x1xf32>
      %c0_7 = arith.constant 0 : index
      %c0_8 = arith.constant 0 : index
      %18 = vector.load %arg10[%c0_7, %c0_8] : memref<128x1xf32, #tpu.memory_space<vmem>>, vector<128x1xf32>
      tpu.vector_store %arg10[%c0_7, %c0_8], %17 {strides = array<i32>} : memref<128x1xf32, #tpu.memory_space<vmem>>, vector<128x1xf32>,
      %cst_9 = arith.constant 0.000000e+00 : f32
      %19 = vector.broadcast %cst_9 : f32 to vector<128x32xf32>
      %c0_10 = arith.constant 0 : index
      %c0_11 = arith.constant 0 : index
      %20 = vector.load %arg11[%c0_10, %c0_11] : memref<128x32xf32, #tpu.memory_space<vmem>>, vector<128x32xf32>
      tpu.vector_store %arg11[%c0_10, %c0_11], %19 {strides = array<i32>} : memref<128x32xf32, #tpu.memory_space<vmem>>, vector<128x32xf32>,
    } else {
    }
    %c127_i32 = arith.constant 127 : i32
    %5 = arith.addi %0, %c127_i32 : i32
    %6 = arith.cmpi sgt, %1, %5 : i32
    %7 = arith.extui %6 : i1 to i32
    %c0_i32_2 = arith.constant 0 : i32
    %8 = arith.cmpi ne, %7, %c0_i32_2 : i32
    scf.if %8 {
      %cst = arith.constant -2.38197633E+38 : f32
      %15 = vector.broadcast %cst : f32 to vector<128x1xf32>
      %16 = arith.index_cast %arg3 : i32 to index
      %c0 = arith.constant 0 : index
      %c0_5 = arith.constant 0 : index
      %17 = vector.load %arg12[%16, %c0, %c0_5] : memref<2x128x1xf32, #tpu.memory_space<vmem>>, vector<1x128x1xf32>
      %18 = vector.shape_cast %17 : vector<1x128x1xf32> to vector<128x1xf32>
      %19 = vector.shape_cast %15 : vector<128x1xf32> to vector<1x128x1xf32>
      tpu.vector_store %arg12[%16, %c0, %c0_5], %19 {strides = array<i32>} : memref<2x128x1xf32, #tpu.memory_space<vmem>>, vector<1x128x1xf32>,
      %cst_6 = arith.constant 0.000000e+00 : bf16
      %20 = vector.broadcast %cst_6 : bf16 to vector<128x128xbf16>
      %21 = arith.index_cast %arg3 : i32 to index
      %c0_7 = arith.constant 0 : index
      %c0_8 = arith.constant 0 : index
      %22 = vector.load %arg13[%21, %c0_7, %c0_8] : memref<2x128x128xbf16, #tpu.memory_space<vmem>>, vector<1x128x128xbf16>
      %23 = vector.shape_cast %22 : vector<1x128x128xbf16> to vector<128x128xbf16>
      %24 = vector.shape_cast %20 : vector<128x128xbf16> to vector<1x128x128xbf16>
      tpu.vector_store %arg13[%21, %c0_7, %c0_8], %24 {strides = array<i32>} : memref<2x128x128xbf16, #tpu.memory_space<vmem>>, vector<1x128x128xbf16>,
    } else {
    }
    %true = arith.constant true
    %9 = arith.xori %6, %true : i1
    %10 = arith.extui %9 : i1 to i32
    %c0_i32_3 = arith.constant 0 : i32
    %11 = arith.cmpi ne, %10, %c0_i32_3 : i32
    scf.if %11 {
      %c0 = arith.constant 0 : index
      %c0_5 = arith.constant 0 : index
      %c0_6 = arith.constant 0 : index
      %c0_7 = arith.constant 0 : index
      %15 = vector.load %arg4[%c0, %c0_5, %c0_6, %c0_7] : memref<1x1x128x32xbf16, #tpu.memory_space<vmem>>, vector<1x1x128x32xbf16>
      %16 = vector.shape_cast %15 : vector<1x1x128x32xbf16> to vector<128x32xbf16>
      %c0_8 = arith.constant 0 : index
      %c0_9 = arith.constant 0 : index
      %c0_10 = arith.constant 0 : index
      %c0_11 = arith.constant 0 : index
      %17 = vector.load %arg5[%c0_8, %c0_9, %c0_10, %c0_11] : memref<1x1x32x128xbf16, #tpu.memory_space<vmem>>, vector<1x1x32x128xbf16>
      %18 = vector.shape_cast %17 : vector<1x1x32x128xbf16> to vector<32x128xbf16>
      %c0_12 = arith.constant 0 : index
      %c0_13 = arith.constant 0 : index
      %c0_14 = arith.constant 0 : index
      %c0_15 = arith.constant 0 : index
      %19 = vector.load %arg6[%c0_12, %c0_13, %c0_14, %c0_15] : memref<1x1x128x32xbf16, #tpu.memory_space<vmem>>, vector<1x1x128x32xbf16>
      %20 = vector.shape_cast %19 : vector<1x1x128x32xbf16> to vector<128x32xbf16>
      %cst = arith.constant dense<0.000000e+00> : vector<128x128xf32>
      %21 = tpu.matmul %16, %18, %cst {dimension_numbers = #tpu.dot_dimension_numbers<[1], [0], [0], [1], [0, 0, 1, 1], [], []>} : vector<128x32xbf16>, vector<32x128xbf16>, vector<128x128xf32> -> vector<128x128xf32>
      %22 = tpu.iota {dimensions = array<i32: 0>} : vector<128x128xi32>
      %23 = vector.broadcast %0 : i32 to vector<128x128xi32>
      %24 = arith.addi %23, %22 : vector<128x128xi32>
      %25 = tpu.iota {dimensions = array<i32: 1>} : vector<128x128xi32>
      %26 = vector.broadcast %1 : i32 to vector<128x128xi32>
      %27 = arith.addi %26, %25 : vector<128x128xi32>
      %28 = arith.cmpi sgt, %27, %24 : vector<128x128xi32>
      %cst_16 = arith.constant -2.38197633E+38 : f32
      %29 = vector.broadcast %cst_16 : f32 to vector<128x128xf32>
      %30 = arith.select %28, %29, %21 : vector<128x128xi1>, vector<128x128xf32>
      %cst_17 = arith.constant dense<0xFF800000> : vector<128xf32>
      %31 = vector.multi_reduction <maximumf>, %30, %cst_17 [1] : vector<128x128xf32> to vector<128xf32>
      %32 = vector.shape_cast %31 : vector<128xf32> to vector<128x1xf32>
      %33 = vector.broadcast %32 : vector<128x1xf32> to vector<128x128xf32>
      %34 = arith.subf %30, %33 : vector<128x128xf32>
      %35 = math.exp %34 : vector<128x128xf32>
      %c0_18 = arith.constant 0 : index
      %c0_19 = arith.constant 0 : index
      %36 = vector.load %arg9[%c0_18, %c0_19] : memref<128x1xf32, #tpu.memory_space<vmem>>, vector<128x1xf32>
      %37 = arith.maximumf %36, %32 : vector<128x1xf32>
      %38 = arith.subf %36, %37 : vector<128x1xf32>
      %39 = math.exp %38 : vector<128x1xf32>
      %40 = arith.subf %32, %37 : vector<128x1xf32>
      %41 = math.exp %40 : vector<128x1xf32>
      %c0_20 = arith.constant 0 : index
      %c0_21 = arith.constant 0 : index
      %42 = vector.load %arg10[%c0_20, %c0_21] : memref<128x1xf32, #tpu.memory_space<vmem>>, vector<128x1xf32>
      %43 = arith.mulf %39, %42 : vector<128x1xf32>
      %cst_22 = arith.constant dense<0.000000e+00> : vector<128xf32>
      %44 = vector.multi_reduction <add>, %35, %cst_22 [1] : vector<128x128xf32> to vector<128xf32>
      %45 = vector.shape_cast %44 : vector<128xf32> to vector<128x1xf32>
      %46 = arith.mulf %41, %45 : vector<128x1xf32>
      %47 = arith.addf %43, %46 : vector<128x1xf32>
      %c0_23 = arith.constant 0 : index
      %c0_24 = arith.constant 0 : index
      %48 = vector.load %arg10[%c0_23, %c0_24] : memref<128x1xf32, #tpu.memory_space<vmem>>, vector<128x1xf32>
      tpu.vector_store %arg10[%c0_23, %c0_24], %47 {strides = array<i32>} : memref<128x1xf32, #tpu.memory_space<vmem>>, vector<128x1xf32>,
      %c0_25 = arith.constant 0 : index
      %c0_26 = arith.constant 0 : index
      %49 = vector.load %arg11[%c0_25, %c0_26] : memref<128x32xf32, #tpu.memory_space<vmem>>, vector<128x32xf32>
      %50 = vector.broadcast %39 : vector<128x1xf32> to vector<128x32xf32>
      %51 = arith.mulf %50, %49 : vector<128x32xf32>
      %52 = vector.broadcast %41 : vector<128x1xf32> to vector<128x128xf32>
      %53 = arith.mulf %35, %52 : vector<128x128xf32>
      %54 = arith.truncf %53 : vector<128x128xf32> to vector<128x128xbf16>
      %cst_27 = arith.constant dense<0.000000e+00> : vector<128x32xf32>
      %55 = tpu.matmul %54, %20, %cst_27 {dimension_numbers = #tpu.dot_dimension_numbers<[1], [0], [0], [1], [0, 0, 1, 1], [], []>} : vector<128x128xbf16>, vector<128x32xbf16>, vector<128x32xf32> -> vector<128x32xf32>
      %56 = arith.addf %51, %55 : vector<128x32xf32>
      %c0_28 = arith.constant 0 : index
      %c0_29 = arith.constant 0 : index
      %57 = vector.load %arg11[%c0_28, %c0_29] : memref<128x32xf32, #tpu.memory_space<vmem>>, vector<128x32xf32>
      tpu.vector_store %arg11[%c0_28, %c0_29], %56 {strides = array<i32>} : memref<128x32xf32, #tpu.memory_space<vmem>>, vector<128x32xf32>,
      %c0_30 = arith.constant 0 : index
      %c0_31 = arith.constant 0 : index
      %58 = vector.load %arg9[%c0_30, %c0_31] : memref<128x1xf32, #tpu.memory_space<vmem>>, vector<128x1xf32>
      tpu.vector_store %arg9[%c0_30, %c0_31], %37 {strides = array<i32>} : memref<128x1xf32, #tpu.memory_space<vmem>>, vector<128x1xf32>,
      %59 = arith.index_cast %arg3 : i32 to index
      %c0_32 = arith.constant 0 : index
      %c0_33 = arith.constant 0 : index
      %60 = vector.load %arg12[%59, %c0_32, %c0_33] : memref<2x128x1xf32, #tpu.memory_space<vmem>>, vector<1x128x1xf32>
      %61 = vector.shape_cast %60 : vector<1x128x1xf32> to vector<128x1xf32>
      %62 = vector.shape_cast %32 : vector<128x1xf32> to vector<1x128x1xf32>
      tpu.vector_store %arg12[%59, %c0_32, %c0_33], %62 {strides = array<i32>} : memref<2x128x1xf32, #tpu.memory_space<vmem>>, vector<1x128x1xf32>,
      %63 = arith.truncf %35 : vector<128x128xf32> to vector<128x128xbf16>
      %64 = arith.index_cast %arg3 : i32 to index
      %c0_34 = arith.constant 0 : index
      %c0_35 = arith.constant 0 : index
      %65 = vector.load %arg13[%64, %c0_34, %c0_35] : memref<2x128x128xbf16, #tpu.memory_space<vmem>>, vector<1x128x128xbf16>
      %66 = vector.shape_cast %65 : vector<1x128x128xbf16> to vector<128x128xbf16>
      %67 = vector.shape_cast %63 : vector<128x128xbf16> to vector<1x128x128xbf16>
      tpu.vector_store %arg13[%64, %c0_34, %c0_35], %67 {strides = array<i32>} : memref<2x128x128xbf16, #tpu.memory_space<vmem>>, vector<1x128x128xbf16>,
    } else {
    }
    %c1_i32 = arith.constant 1 : i32
    %12 = arith.cmpi eq, %arg3, %c1_i32 : i32
    %13 = arith.extui %12 : i1 to i32
    %c0_i32_4 = arith.constant 0 : i32
    %14 = arith.cmpi ne, %13, %c0_i32_4 : i32
    scf.if %14 {
      %c0 = arith.constant 0 : index
      %c0_5 = arith.constant 0 : index
      %15 = vector.load %arg9[%c0, %c0_5] : memref<128x1xf32, #tpu.memory_space<vmem>>, vector<128x1xf32>
      %c0_6 = arith.constant 0 : index
      %c0_7 = arith.constant 0 : index
      %16 = vector.load %arg10[%c0_6, %c0_7] : memref<128x1xf32, #tpu.memory_space<vmem>>, vector<128x1xf32>
      %17 = tpu.reciprocal %16 : vector<128x1xf32> -> vector<128x1xf32>
      %c0_8 = arith.constant 0 : index
      %c0_9 = arith.constant 0 : index
      %18 = vector.load %arg11[%c0_8, %c0_9] : memref<128x32xf32, #tpu.memory_space<vmem>>, vector<128x32xf32>
      %19 = vector.broadcast %17 : vector<128x1xf32> to vector<128x32xf32>
      %20 = arith.mulf %18, %19 : vector<128x32xf32>
      %c0_10 = arith.constant 0 : index
      %c0_11 = arith.constant 0 : index
      %c0_12 = arith.constant 0 : index
      %c0_13 = arith.constant 0 : index
      %21 = vector.load %arg7[%c0_10, %c0_11, %c0_12, %c0_13] : memref<1x1x128x32xf32, #tpu.memory_space<vmem>>, vector<1x1x128x32xf32>
      %22 = vector.shape_cast %21 : vector<1x1x128x32xf32> to vector<128x32xf32>
      %23 = vector.shape_cast %20 : vector<128x32xf32> to vector<1x1x128x32xf32>
      tpu.vector_store %arg7[%c0_10, %c0_11, %c0_12, %c0_13], %23 {strides = array<i32>} : memref<1x1x128x32xf32, #tpu.memory_space<vmem>>, vector<1x1x128x32xf32>,
      %c0_14 = arith.constant 0 : index
      %c0_15 = arith.constant 0 : index
      %c0_16 = arith.constant 0 : index
      %24 = vector.load %arg12[%c0_14, %c0_15, %c0_16] : memref<2x128x1xf32, #tpu.memory_space<vmem>>, vector<1x128x1xf32>
      %25 = vector.shape_cast %24 : vector<1x128x1xf32> to vector<128x1xf32>
      %26 = arith.subf %25, %15 : vector<128x1xf32>
      %27 = math.exp %26 : vector<128x1xf32>
      %28 = arith.mulf %27, %17 : vector<128x1xf32>
      %c0_17 = arith.constant 0 : index
      %c0_18 = arith.constant 0 : index
      %c0_19 = arith.constant 0 : index
      %29 = vector.load %arg13[%c0_17, %c0_18, %c0_19] : memref<2x128x128xbf16, #tpu.memory_space<vmem>>, vector<1x128x128xbf16>
      %30 = vector.shape_cast %29 : vector<1x128x128xbf16> to vector<128x128xbf16>
      %31 = arith.extf %30 : vector<128x128xbf16> to vector<128x128xf32>
      %32 = vector.broadcast %28 : vector<128x1xf32> to vector<128x128xf32>
      %33 = arith.mulf %31, %32 : vector<128x128xf32>
      %34 = arith.truncf %33 : vector<128x128xf32> to vector<128x128xbf16>
      %c0_20 = arith.constant 0 : index
      %c0_21 = arith.constant 0 : index
      %c0_22 = arith.constant 0 : index
      %c0_23 = arith.constant 0 : index
      %35 = vector.load %arg8[%c0_20, %c0_21, %c0_22, %c0_23] : memref<1x1x128x256xbf16, #tpu.memory_space<vmem>>, vector<1x1x128x128xbf16>
      %36 = vector.shape_cast %35 : vector<1x1x128x128xbf16> to vector<128x128xbf16>
      %37 = vector.shape_cast %34 : vector<128x128xbf16> to vector<1x1x128x128xbf16>
      tpu.vector_store %arg8[%c0_20, %c0_21, %c0_22, %c0_23], %37 {strides = array<i32>} : memref<1x1x128x256xbf16, #tpu.memory_space<vmem>>, vector<1x1x128x128xbf16>,
      %c1 = arith.constant 1 : index
      %c0_24 = arith.constant 0 : index
      %c0_25 = arith.constant 0 : index
      %38 = vector.load %arg12[%c1, %c0_24, %c0_25] : memref<2x128x1xf32, #tpu.memory_space<vmem>>, vector<1x128x1xf32>
      %39 = vector.shape_cast %38 : vector<1x128x1xf32> to vector<128x1xf32>
      %40 = arith.subf %39, %15 : vector<128x1xf32>
      %41 = math.exp %40 : vector<128x1xf32>
      %42 = arith.mulf %41, %17 : vector<128x1xf32>
      %c1_26 = arith.constant 1 : index
      %c0_27 = arith.constant 0 : index
      %c0_28 = arith.constant 0 : index
      %43 = vector.load %arg13[%c1_26, %c0_27, %c0_28] : memref<2x128x128xbf16, #tpu.memory_space<vmem>>, vector<1x128x128xbf16>
      %44 = vector.shape_cast %43 : vector<1x128x128xbf16> to vector<128x128xbf16>
      %45 = arith.extf %44 : vector<128x128xbf16> to vector<128x128xf32>
      %46 = vector.broadcast %42 : vector<128x1xf32> to vector<128x128xf32>
      %47 = arith.mulf %45, %46 : vector<128x128xf32>
      %48 = arith.truncf %47 : vector<128x128xf32> to vector<128x128xbf16>
      %c0_29 = arith.constant 0 : index
      %c0_30 = arith.constant 0 : index
      %c0_31 = arith.constant 0 : index
      %c128 = arith.constant 128 : index
      %49 = vector.load %arg8[%c0_29, %c0_30, %c0_31, %c128] : memref<1x1x128x256xbf16, #tpu.memory_space<vmem>>, vector<1x1x128x128xbf16>
      %50 = vector.shape_cast %49 : vector<1x1x128x128xbf16> to vector<128x128xbf16>
      %51 = vector.shape_cast %48 : vector<128x128xbf16> to vector<1x1x128x128xbf16>
      tpu.vector_store %arg8[%c0_29, %c0_30, %c0_31, %c128], %51 {strides = array<i32>} : memref<1x1x128x256xbf16, #tpu.memory_space<vmem>>, vector<1x1x128x128xbf16>,
    } else {
    }
    return
  }
  func.func @transform_0(%arg0: i32, %arg1: i32, %arg2: i32, %arg3: i32) -> (i32, i32, i32, i32) {
    %c0_i32 = arith.constant 0 : i32
    %c0_i32_0 = arith.constant 0 : i32
    return %arg0, %arg1, %arg2, %c0_i32 : i32, i32, i32, i32
  }
  func.func @transform_1(%arg0: i32, %arg1: i32, %arg2: i32, %arg3: i32) -> (i32, i32, i32, i32) {
    %c0_i32 = arith.constant 0 : i32
    %c0_i32_0 = arith.constant 0 : i32
    return %arg0, %arg1, %c0_i32, %arg3 : i32, i32, i32, i32
  }
  func.func @transform_2(%arg0: i32, %arg1: i32, %arg2: i32, %arg3: i32) -> (i32, i32, i32, i32) {
    %c0_i32 = arith.constant 0 : i32
    %c0_i32_0 = arith.constant 0 : i32
    return %arg0, %arg1, %arg3, %c0_i32 : i32, i32, i32, i32
  }
  func.func @transform_3(%arg0: i32, %arg1: i32, %arg2: i32, %arg3: i32) -> (i32, i32, i32, i32) {
    %c0_i32 = arith.constant 0 : i32
    %c0_i32_0 = arith.constant 0 : i32
    return %arg0, %arg1, %arg2, %c0_i32 : i32, i32, i32, i32
  }
  func.func @transform_4(%arg0: i32, %arg1: i32, %arg2: i32, %arg3: i32) -> (i32, i32, i32, i32) {
    %c0_i32 = arith.constant 0 : i32
    %c0_i32_0 = arith.constant 0 : i32
    return %arg0, %arg1, %arg2, %c0_i32 : i32, i32, i32, i32
  }
}

</mosaic_0001>

<bundles_post_ra>
// kernel: tpu_custom_call.1
= control target key start
LH: loop header
LB: loop body
LE: loop exit
PB: predicated region body
PF: predicated region fallthrough
CT: control target
= control target key end

     0   :  { %s4793_s0 = inlined_call_operand.vmem [shape: bf16[2,4,256,32], index: 0, kind: input, shape index: {}]   ;;  %s4794_s1 = inlined_call_operand.vmem [shape: bf16[2,4,32,256], index: 1, kind: input, shape index: {}]   ;;  %s4795_s2 = inlined_call_operand.vmem [shape: bf16[2,4,256,32], index: 2, kind: input, shape index: {}]   ;;  %s4796_s3 = inlined_call_operand.vmem [shape: f32[2,4,256,32], index: 3, kind: output, shape index: {0}]   ;;  %s4797_s4 = inlined_call_operand.hbm [shape: bf16[2,4,256,256], index: 4, kind: output, shape index: {1}]  }
   0x1   :  { %4821 = sst [smem:[#allocation33_spill]] %s4793_s0 }
   0x2   :  { %4822 = sst [smem:[#allocation34_spill]] %s4794_s1 }
   0x3   :  { %4823 = sst [smem:[#allocation35_spill]] %s4795_s2 }
   0x4   :  { %4824 = sst [smem:[#allocation36_spill]] %s4796_s3 }
   0x5   :  { %4825 = sst [smem:[#allocation37_spill]] %s4797_s4 }
   0x6   :  { %10 = vsyncpa [#allocation9], 0 }
   0x7   :  { %12 = vsyncpa [#allocation9 + $0x1], 0  ;;  %s3539_s15 = smov 0   ;;  %s3541_s16 = smov 0  }
   0x8   :  { %s3543_s17 = smov 0   ;;  %s3545_s18 = smov 0  }
   0x9   :  { %s3547_s19 = smov 0   ;;  %s3549_s20 = smov 0  }
   0xa   :  { %s3551_s21 = smov 0   ;;  %s3553_s22 = smov 0  }
   0xb   :  { %s3555_s23 = smov 0   ;;  %s3557_s24 = smov 0  }
   0xc   :  { %s3559_s25 = smov 0   ;;  %s3561_s26 = smov 0  }
   0xd   :  { %s3563_s27 = smov 0   ;;  %s3565_s28 = smov 0  }
   0xe LB: > { %4826 = sst [smem:[#allocation11_spill]] %s3451_s15  ;;  %s33_s29 = sadd.s32 1, %s3487_s24  ;;  %s3503_s28 = sphi %s3565_s28, %s18_s28   ;;  %s3499_s27 = sphi %s3563_s27, %s4895_s27   ;;  %s3495_s26 = sphi %s3561_s26, %s4894_s26   ;;  %s3491_s25 = sphi %s3559_s25, %s4893_s25   ;;  %s3487_s24 = sphi %s3557_s24, %s4900_s24   ;;  %s3483_s23 = sphi %s3555_s23, %s4891_s23   ;;  %s3479_s22 = sphi %s3553_s22, %s4890_s22   ;;  %s3475_s21 = sphi %s3551_s21, %s4889_s21   ;;  %s3471_s20 = sphi %s3549_s20, %s4888_s20   ;;  %s3467_s19 = sphi %s3547_s19, %s4887_s19   ;;  %s3463_s18 = sphi %s3545_s18, %s4886_s18   ;;  %s3459_s17 = sphi %s3543_s17, %s4899_s17   ;;  %s3455_s16 = sphi %s3541_s16, %s4898_s16   ;;  %s3451_s15 = sphi %s3539_s15, %s4897_s15  }
   0xf   : > { %4827 = sst [smem:[#allocation12_spill]] %s3459_s17  ;;  %p34_p0 = scmp.ge.s32.totalorder %s33_s29, 2 }
  0x10   : > { %4828 = sst [smem:[#allocation13_spill]] %s3467_s19  ;;  %s36_s30 = sadd.s32 1, %s3491_s25 }
  0x11   : > { %4829 = sst [smem:[#allocation14_spill]] %s3487_s24  ;;  %s2637_s5 = sadd.s32 4294967295, %s3503_s28  }
  0x12   : > { %4830 = sst [smem:[#allocation15_spill]] %s3491_s25  ;;  %s2638_s6 = sadd.s32 4294967294, %s3503_s28  }
  0x13   : > { %4831 = sst [smem:[#allocation16_spill]] %s3495_s26  ;;  %s40_s7 = sadd.s32 1, %s3495_s26 }
  0x14   : > { %4832 = sst [smem:[#allocation17_spill]] %s3499_s27  ;;  %s4902_s30 = smov (!%p34_p0, %s36_s30), %s3491_s25 }
  0x15   : > { %s44_s8 = sadd.s32 1, %s3499_s27  ;;  %p92_p1 = scmp.ne.s32.totalorder %s3467_s19, %s3463_s18 }
  0x16   : > { %p38_p2 = scmp.ge.s32.totalorder %s4902_s30, 2  ;;  %p93_p3 = scmp.eq.s32.totalorder %s3503_s28, 0 }
  0x17   : > { %s4904_s29 = smov (%p34_p0, %s33_s29), 0  ;;  %p185_p5 = scmp.ne.s32.totalorder %s3459_s17, %s3455_s16 }
  0x18   : > { %4833 = sst [smem:[#allocation18_spill]] %s4904_s29  ;;  %s4906_s30 = smov (%p38_p2, %s4902_s30), 0 }
  0x19   : > { %4834 = sst [smem:[#allocation19_spill]] %s4906_s30  ;;  %s4908_s7 = smov (!%p38_p2, %s40_s7), %s3495_s26 }
  0x1a   : > { %p3624_p4 = por %p93_p3, %p92_p1  ;;  %p42_p6 = scmp.ge.s32.totalorder %s4908_s7, 4 }
  0x1b   : > { %p186_p7 = scmp.eq.s32.totalorder %s2637_s5, 31  ;;  %p191_p8 = scmp.ne.s32.totalorder %s3455_s16, %s3451_s15 }
  0x1c   : > { %p192_p9 = scmp.eq.s32.totalorder %s2638_s6, 31  ;;  %s4910_s7 = smov (%p42_p6, %s4908_s7), 0 }
  0x1d   : > { %4836 = sst [smem:[#allocation20_spill]] %s4910_s7  ;;  %s4912_s8 = smov (!%p42_p6, %s44_s8), %s3499_s27 }
  0x1e   : > { %p3635_p10 = por %p186_p7, %p185_p5  ;;  %p46_p11 = scmp.ge.s32.totalorder %s4912_s8, 2 }
  0x1f   : > { %p3639_p12 = por %p192_p9, %p191_p8  ;;  %s79_s12 = ssub.s32 %s3495_s26, %s4910_s7 }
  0x20   : > { %s4837_s10 = scalar_select %p3635_p10, 1, 0 }
  0x21   : > { %s4914_s8 = smov (%p46_p11, %s4912_s8), 0  ;;  %s81_s13 = ssub.s32 %s3487_s24, %s4904_s29 }
  0x22   : > { %4838 = sst [smem:[#allocation21_spill]] %s4837_s10  ;;  %s171_s14 = ssub.s32 %s3491_s25, %s4906_s30 }
  0x23   : > { %4840 = sst [smem:[#allocation22_spill]] %s4914_s8  ;;  %s78_s5 = ssub.s32 %s3499_s27, %s4914_s8 }
  0x24   : > { %s85_s6 = sadd.s32 1, %s3467_s19  ;;  %s80_s15 = sor.u32 %s79_s12, %s78_s5 }
  0x25   : > { %s175_s4 = sadd.s32 1, %s3459_s17  ;;  %s82_s2 = sor.u32 %s81_s13, %s80_s15 }
  0x26   : > { %s172_s3 = sor.u32 %s171_s14, %s80_s15  ;;  %p83_p13 = scmp.eq.s32.totalorder %s82_s2, 0 }
  0x27   : > { %p173_p0 = scmp.eq.s32.totalorder %s172_s3, 0  ;;  %p2640_p1 = scmp.ge.s32.totalorder %s3503_s28, 32 }
  0x28   : > { %s3656_s10 = scalar_select %p83_p13, %s3467_s19, %s85_s6  }
  0x29   : > { %s3659_s0 = scalar_select %p173_p0, %s3459_s17, %s175_s4  }
  0x2a   : > { %4841 = sst [smem:[#allocation23_spill]] %s3656_s10  ;;  %208 = sbr.rel (%p2640_p1) target bundleno = 60 (0x3c), region = 16 }
  0x2b   : > { %4842 = sst [smem:[#allocation24_spill]] %s3659_s0 }
  0x2f   : > { %228 = sbr.rel (!%p3624_p4) target bundleno = 60 (0x3c), region = 24  ;;  %s230_s12 = sand.u32 (%p3624_p4), 1, %s3467_s19  }
  0x30   : > { %s2642_s5 = sshll.u32 (%p3624_p4), %s3495_s26, 3  ;;  %s2641_s13 = sshll.u32 (%p3624_p4), %s230_s12, 4 }
  0x31   : > { %s234_s15 = sadd.s32 (%p3624_p4), %s3487_s24, %s2642_s5  ;;  %s2643_s2 = sshll.u32 (%p3624_p4), %s3499_s27, 5 }
  0x32   : > { %s236_s3 = sadd.s32 (%p3624_p4), %s2643_s2, %s234_s15  ;;  %s4843_s1 = sld [smem:[#allocation34_spill]] (%p3624_p4) }
  0x33   : > { %s2644_s14 = sshll.u32 (%p3624_p4), %s236_s3, 2  ;;  %s232_s9 = scalar_lea.vmem (%p3624_p4), [#allocation7], %s2641_s13 }
  0x38   : > { %s238_s8 = scalar_lea.vmem %s4843_s1, %s2644_s14 }
  0x39   : > { %v255_v0 = vld [vmem:[%s238_s8] sm:$0xf]  ;;  %v257_v1 = vld [vmem:[%s238_s8 + $0x8] sm:$0xf]  ;;  %v259_v2 = vld [vmem:[%s238_s8 + $0x10] sm:$0xf] }
  0x3a   : > { %256 = vst [vmem:[%s232_s9] sm:$0xf] %v255_v0  ;;  %258 = vst [vmem:[%s232_s9 + $0x4] sm:$0xf] %v257_v1  ;;  %v261_v3 = vld [vmem:[%s238_s8 + $0x18] sm:$0xf] }
  0x3b   : > { %260 = vst [vmem:[%s232_s9 + $0x8] sm:$0xf] %v259_v2  ;;  %262 = vst [vmem:[%s232_s9 + $0xc] sm:$0xf] %v261_v3 }
  0x3c PF: > { %p2645_p2 = scmp.ge.s32.totalorder %s3503_s28, 1  ;;  %p310_p3 = scmp.lt.s32.totalorder %s3503_s28, 33 }
  0x3e   : > { %p311_p4 = pnand %p2645_p2, %p310_p3 }
  0x3f   : > { %s317_s12 = sand.u32 (!%p311_p4), 1, %s3463_s18   ;;  %s4804_s8 = sand.u32 (!%p311_p4), 1, %s3455_s16  }
  0x40   : > { %314 = sbr.rel (%p311_p4) target bundleno = 1158 (0x486), region = 69  ;;  %s3675_s5 = sshll.u32 (!%p311_p4), %s317_s12, 4 }
  0x41   : > { %s2647_s13 = sshll.u32 (!%p311_p4), %s4804_s8, 7  ;;  %s2648_s15 = sshll.u32 (!%p311_p4), %s3475_s21, 4 }
  0x42   : > { %p382_p5 = scmp.lt.s32.totalorder (!%p311_p4), %s3483_s23, 1  ;;  %p384_p6 = scmp.lt.s32.totalorder (!%p311_p4), %s3479_s22, 3 }
  0x43   : > { %p386_p7 = scmp.lt.s32.totalorder (!%p311_p4), %s2648_s15, 31  ;;  %s2652_s9 = sshll.u32 (!%p311_p4), %s3471_s20, 4 }
  0x44   : > { %p400_p8 = scmp.lt.s32.totalorder (!%p311_p4), %s2652_s9, 31  ;;  %s4844_s30 = sld [smem:[#allocation33_spill]] (!%p311_p4) }
  0x45   : > { %s383_s2 = scalar_select %p382_p5, %s3483_s23, 1 }
  0x46   : > { %s385_s3 = scalar_select %p384_p6, %s3479_s22, 3 }
  0x47   : > { %s4916_s15 = smov (!%p386_p7, %s2648_s15), 31  ;;  %s2650_s6 = sshll.u32 %s383_s2, 7 }
  0x48   : > { %s2649_s14 = sshll.u32 %s385_s3, 5  ;;  %s4845_s25 = sld [smem:[#allocation36_spill]] }
  0x49   : > { %s389_s4 = sadd.s32 %s2649_s14, %s4916_s15  ;;  %s4918_s9 = smov (!%p400_p8, %s2652_s9), 31 }
  0x4a   : > { %s391_s18 = sadd.s32 %s2650_s6, %s389_s4  ;;  %s2660_s3 = sshll.u32 %s3475_s21, 7 }
  0x4b   : > { %s2651_s12 = sshll.u32 %s391_s18, 2  ;;  %s2659_s1 = sshll.u32 %s391_s18, 3 }
  0x4c   : > { %s3688_s29 = scalar_lea.vmem %s4844_s30, %s2651_s12  ;;  %s3697_s2 = sshll.u32 %s3471_s20, 7 }
  0x4d   : > { %s403_s15 = sadd.s32 %s2649_s14, %s4918_s9  ;;  %s4846_s18 = sld [smem:[#allocation35_spill]] }
  0x4e   : > { %s3693_s24 = scalar_lea.vmem %s4845_s25, %s2659_s1  ;;  %s405_s10 = sadd.s32 %s2650_s6, %s403_s15 }
  0x4f   : > { %s2655_s4 = sshll.u32 %s405_s10, 2  ;;  %s319_s7 = scalar_lea.vmem [#allocation7], %s3675_s5 }
  0x50   : > { %s3705_s30 = scalar_lea.vmem [#allocation8], %s2647_s13  ;;  %p2662_p9 = scmp.ne.s32.totalorder %s3471_s20, 0 }
  0x52   : > { %430 = sbr.rel (%p2662_p9) target bundleno = 112 (0x70), region = 77 }
  0x53   : > { %s3702_s17 = scalar_lea.vmem %s4846_s18, %s2655_s4 }
  0x57   : > { %vm431_vm0 = vcmask 7168   ;;  %vm464_vm1 = vcmask 261120   ;;  %v3505_v4 = vmov -2.3819763e+38   ;;  %v3506_v5 = vmov 0.0  }
  0x58   : > { %432 = vst.msk [vmem:[#allocation2] sm:$0xff] %vm431_vm0, %v3505_v4  ;;  %433 = vst.msk [vmem:[#allocation2 + $0x8] sm:$0xff] %vm431_vm0, %v3505_v4 }
  0x59   : > { %434 = vst.msk [vmem:[#allocation2 + $0x10] sm:$0xff] %vm431_vm0, %v3505_v4  ;;  %435 = vst.msk [vmem:[#allocation2 + $0x18] sm:$0xff] %vm431_vm0, %v3505_v4 }
  0x5a   : > { %436 = vst.msk [vmem:[#allocation2 + $0x20] sm:$0xff] %vm431_vm0, %v3505_v4  ;;  %437 = vst.msk [vmem:[#allocation2 + $0x28] sm:$0xff] %vm431_vm0, %v3505_v4 }
  0x5b   : > { %438 = vst.msk [vmem:[#allocation2 + $0x30] sm:$0xff] %vm431_vm0, %v3505_v4  ;;  %439 = vst.msk [vmem:[#allocation2 + $0x38] sm:$0xff] %vm431_vm0, %v3505_v4 }
  0x5c   : > { %440 = vst.msk [vmem:[#allocation2 + $0x40] sm:$0xff] %vm431_vm0, %v3505_v4  ;;  %441 = vst.msk [vmem:[#allocation2 + $0x48] sm:$0xff] %vm431_vm0, %v3505_v4 }
  0x5d   : > { %442 = vst.msk [vmem:[#allocation2 + $0x50] sm:$0xff] %vm431_vm0, %v3505_v4  ;;  %443 = vst.msk [vmem:[#allocation2 + $0x58] sm:$0xff] %vm431_vm0, %v3505_v4 }
  0x5e   : > { %444 = vst.msk [vmem:[#allocation2 + $0x60] sm:$0xff] %vm431_vm0, %v3505_v4  ;;  %445 = vst.msk [vmem:[#allocation2 + $0x68] sm:$0xff] %vm431_vm0, %v3505_v4 }
  0x5f   : > { %446 = vst.msk [vmem:[#allocation2 + $0x70] sm:$0xff] %vm431_vm0, %v3505_v4  ;;  %447 = vst.msk [vmem:[#allocation2 + $0x78] sm:$0xff] %vm431_vm0, %v3505_v4 }
  0x60   : > { %448 = vst.msk [vmem:[#allocation3] sm:$0xff] %vm431_vm0, %v3506_v5  ;;  %449 = vst.msk [vmem:[#allocation3 + $0x8] sm:$0xff] %vm431_vm0, %v3506_v5 }
  0x61   : > { %450 = vst.msk [vmem:[#allocation3 + $0x10] sm:$0xff] %vm431_vm0, %v3506_v5  ;;  %451 = vst.msk [vmem:[#allocation3 + $0x18] sm:$0xff] %vm431_vm0, %v3506_v5 }
  0x62   : > { %452 = vst.msk [vmem:[#allocation3 + $0x20] sm:$0xff] %vm431_vm0, %v3506_v5  ;;  %453 = vst.msk [vmem:[#allocation3 + $0x28] sm:$0xff] %vm431_vm0, %v3506_v5 }
  0x63   : > { %454 = vst.msk [vmem:[#allocation3 + $0x30] sm:$0xff] %vm431_vm0, %v3506_v5  ;;  %455 = vst.msk [vmem:[#allocation3 + $0x38] sm:$0xff] %vm431_vm0, %v3506_v5 }
  0x64   : > { %456 = vst.msk [vmem:[#allocation3 + $0x40] sm:$0xff] %vm431_vm0, %v3506_v5  ;;  %457 = vst.msk [vmem:[#allocation3 + $0x48] sm:$0xff] %vm431_vm0, %v3506_v5 }
  0x65   : > { %458 = vst.msk [vmem:[#allocation3 + $0x50] sm:$0xff] %vm431_vm0, %v3506_v5  ;;  %459 = vst.msk [vmem:[#allocation3 + $0x58] sm:$0xff] %vm431_vm0, %v3506_v5 }
  0x66   : > { %460 = vst.msk [vmem:[#allocation3 + $0x60] sm:$0xff] %vm431_vm0, %v3506_v5  ;;  %461 = vst.msk [vmem:[#allocation3 + $0x68] sm:$0xff] %vm431_vm0, %v3506_v5 }
  0x67   : > { %462 = vst.msk [vmem:[#allocation3 + $0x70] sm:$0xff] %vm431_vm0, %v3506_v5  ;;  %463 = vst.msk [vmem:[#allocation3 + $0x78] sm:$0xff] %vm431_vm0, %v3506_v5 }
  0x68   : > { %465 = vst.msk [vmem:[#allocation4] sm:$0xff] %vm464_vm1, %v3506_v5  ;;  %466 = vst.msk [vmem:[#allocation4 + $0x8] sm:$0xff] %vm464_vm1, %v3506_v5 }
  0x69   : > { %467 = vst.msk [vmem:[#allocation4 + $0x10] sm:$0xff] %vm464_vm1, %v3506_v5  ;;  %468 = vst.msk [vmem:[#allocation4 + $0x18] sm:$0xff] %vm464_vm1, %v3506_v5 }
  0x6a   : > { %469 = vst.msk [vmem:[#allocation4 + $0x20] sm:$0xff] %vm464_vm1, %v3506_v5  ;;  %470 = vst.msk [vmem:[#allocation4 + $0x28] sm:$0xff] %vm464_vm1, %v3506_v5 }
  0x6b   : > { %471 = vst.msk [vmem:[#allocation4 + $0x30] sm:$0xff] %vm464_vm1, %v3506_v5  ;;  %472 = vst.msk [vmem:[#allocation4 + $0x38] sm:$0xff] %vm464_vm1, %v3506_v5 }
  0x6c   : > { %473 = vst.msk [vmem:[#allocation4 + $0x40] sm:$0xff] %vm464_vm1, %v3506_v5  ;;  %474 = vst.msk [vmem:[#allocation4 + $0x48] sm:$0xff] %vm464_vm1, %v3506_v5 }
  0x6d   : > { %475 = vst.msk [vmem:[#allocation4 + $0x50] sm:$0xff] %vm464_vm1, %v3506_v5  ;;  %476 = vst.msk [vmem:[#allocation4 + $0x58] sm:$0xff] %vm464_vm1, %v3506_v5 }
  0x6e   : > { %477 = vst.msk [vmem:[#allocation4 + $0x60] sm:$0xff] %vm464_vm1, %v3506_v5  ;;  %478 = vst.msk [vmem:[#allocation4 + $0x68] sm:$0xff] %vm464_vm1, %v3506_v5 }
  0x6f   : > { %479 = vst.msk [vmem:[#allocation4 + $0x70] sm:$0xff] %vm464_vm1, %v3506_v5  ;;  %480 = vst.msk [vmem:[#allocation4 + $0x78] sm:$0xff] %vm464_vm1, %v3506_v5 }
  0x70 PF: > { %s3758_s0 = sadd.s32 127, %s2660_s3 }
  0x71   : > { %p2663_p11 = scmp.le.s32.totalorder %s3697_s2, %s3758_s0 }
  0x72   : > { %s2752_s1 = sshll.u32 (!%p2663_p11), %s3471_s20, 6  ;;  %s486_s19 = scalar_lea.vmem (!%p2663_p11), [#allocation5], %s3697_s2 }
  0x73   : > { %485 = sbr.rel (%p2663_p11) target bundleno = 137 (0x89), region = 81  ;;  %s506_s25 = scalar_lea.vmem (!%p2663_p11), [#allocation6], %s2752_s1 }
  0x78   : > { %vm487_vm2 = vcmask 7168   ;;  %v3507_v6 = vmov -2.3819763e+38   ;;  %v3508_v7 = vmov 0  }
  0x79   : > { %488 = vst.msk [vmem:[%s486_s19] sm:$0xff] %vm487_vm2, %v3507_v6  ;;  %489 = vst.msk [vmem:[%s486_s19 + $0x8] sm:$0xff] %vm487_vm2, %v3507_v6 }
  0x7a   : > { %490 = vst.msk [vmem:[%s486_s19 + $0x10] sm:$0xff] %vm487_vm2, %v3507_v6  ;;  %491 = vst.msk [vmem:[%s486_s19 + $0x18] sm:$0xff] %vm487_vm2, %v3507_v6 }
  0x7b   : > { %492 = vst.msk [vmem:[%s486_s19 + $0x20] sm:$0xff] %vm487_vm2, %v3507_v6  ;;  %493 = vst.msk [vmem:[%s486_s19 + $0x28] sm:$0xff] %vm487_vm2, %v3507_v6 }
  0x7c   : > { %494 = vst.msk [vmem:[%s486_s19 + $0x30] sm:$0xff] %vm487_vm2, %v3507_v6  ;;  %495 = vst.msk [vmem:[%s486_s19 + $0x38] sm:$0xff] %vm487_vm2, %v3507_v6 }
  0x7d   : > { %496 = vst.msk [vmem:[%s486_s19 + $0x40] sm:$0xff] %vm487_vm2, %v3507_v6  ;;  %497 = vst.msk [vmem:[%s486_s19 + $0x48] sm:$0xff] %vm487_vm2, %v3507_v6 }
  0x7e   : > { %498 = vst.msk [vmem:[%s486_s19 + $0x50] sm:$0xff] %vm487_vm2, %v3507_v6  ;;  %499 = vst.msk [vmem:[%s486_s19 + $0x58] sm:$0xff] %vm487_vm2, %v3507_v6 }
  0x7f   : > { %500 = vst.msk [vmem:[%s486_s19 + $0x60] sm:$0xff] %vm487_vm2, %v3507_v6  ;;  %501 = vst.msk [vmem:[%s486_s19 + $0x68] sm:$0xff] %vm487_vm2, %v3507_v6 }
  0x80   : > { %502 = vst.msk [vmem:[%s486_s19 + $0x70] sm:$0xff] %vm487_vm2, %v3507_v6  ;;  %503 = vst.msk [vmem:[%s486_s19 + $0x78] sm:$0xff] %vm487_vm2, %v3507_v6 }
  0x81   : > { %507 = vst [vmem:[%s506_s25] sm:$0xf] %v3508_v7  ;;  %508 = vst [vmem:[%s506_s25 + $0x4] sm:$0xf] %v3508_v7 }
  0x82   : > { %509 = vst [vmem:[%s506_s25 + $0x8] sm:$0xf] %v3508_v7  ;;  %510 = vst [vmem:[%s506_s25 + $0xc] sm:$0xf] %v3508_v7 }
  0x83   : > { %511 = vst [vmem:[%s506_s25 + $0x10] sm:$0xf] %v3508_v7  ;;  %512 = vst [vmem:[%s506_s25 + $0x14] sm:$0xf] %v3508_v7 }
  0x84   : > { %513 = vst [vmem:[%s506_s25 + $0x18] sm:$0xf] %v3508_v7  ;;  %514 = vst [vmem:[%s506_s25 + $0x1c] sm:$0xf] %v3508_v7 }
  0x85   : > { %515 = vst [vmem:[%s506_s25 + $0x20] sm:$0xf] %v3508_v7  ;;  %516 = vst [vmem:[%s506_s25 + $0x24] sm:$0xf] %v3508_v7 }
  0x86   : > { %517 = vst [vmem:[%s506_s25 + $0x28] sm:$0xf] %v3508_v7  ;;  %518 = vst [vmem:[%s506_s25 + $0x2c] sm:$0xf] %v3508_v7 }
  0x87   : > { %519 = vst [vmem:[%s506_s25 + $0x30] sm:$0xf] %v3508_v7  ;;  %520 = vst [vmem:[%s506_s25 + $0x34] sm:$0xf] %v3508_v7 }
  0x88   : > { %521 = vst [vmem:[%s506_s25 + $0x38] sm:$0xf] %v3508_v7  ;;  %522 = vst [vmem:[%s506_s25 + $0x3c] sm:$0xf] %v3508_v7 }
  0x89 PF: > { %p2666_p13 = scmp.gt.s32.totalorder %s3697_s2, %s3758_s0 }
  0x8b   : > { %526 = sbr.rel (%p2666_p13) target bundleno = 885 (0x375), region = 85 }
  0x90   : > { %v3151_v8 = vld [vmem:[%s319_s7 + $0x8] sm:$0xff]   ;;  %v3152_v9 = vld [vmem:[%s319_s7] sm:$0xff]   ;;  %vm615_vm3 = vcmask 261120   ;;  %v737_v18 = vlaneseq  ;;  %v3806_v21 = vstv %s2660_s3  ;;  %v773_v22 = vstv %s3697_s2  ;;  %s3920_s26 = scalar_lea.vmem [#allocation5], %s3697_s2  ;;  %s2769_s27 = sshll.u32 %s3471_s20, 6 }
  0x91   : > { %2954 = vmatprep.subr.bf16.mxu0 %v3151_v8  ;;  %v3153_v10 = vld [vmem:[%s3688_s29] sm:$0xff]   ;;  %v3154_v11 = vld [vmem:[%s3688_s29 + $0x8] sm:$0xff]   ;;  %v3155_v12 = vld [vmem:[%s3688_s29 + $0x10] sm:$0xff]  }
  0x92   : > { %2955 = vmatpush3.bf16.msra.mxu0 %v3151_v8  ;;  %2958 = vmatprep.mubr.msk.bf16.mxu0 %vm615_vm3, %v3153_v10  ;;  %v3156_v13 = vld [vmem:[%s3688_s29 + $0x18] sm:$0xff]   ;;  %v3157_v14 = vld [vmem:[%s3688_s29 + $0x20] sm:$0xff]   ;;  %v3158_v15 = vld [vmem:[%s3688_s29 + $0x28] sm:$0xff]   ;;  %v3802_v19 = vshrl.u32 %v737_v18, 7  ;;  %v772_v20 = vand.u32 127, %v737_v18 }
  0x93   : > { %2956 = vmatprep.subr.bf16.mxu0 %v3152_v9  ;;  %v3159_v16 = vld [vmem:[%s3688_s29 + $0x30] sm:$0xff]   ;;  %v3160_v17 = vld [vmem:[%s3688_s29 + $0x38] sm:$0xff]   ;;  %s4058_s29 = scalar_lea.vmem [#allocation6], %s2769_s27 }
  0x94   : > { %v755_v23 = vadd.s32 %v3806_v21, %v3802_v19  ;;  %v739_v24 = vadd.s32 8, %v3802_v19  ;;  %v3812_v25 = vadd.s32 %v773_v22, %v772_v20  ;;  %v744_v26 = vadd.s32 48, %v3802_v19 }
  0x95   : > { %v742_v29 = vadd.s32 32, %v3802_v19  ;;  %v745_v35 = vadd.s32 56, %v3802_v19  ;;  %v743_v36 = vadd.s32 40, %v3802_v19  ;;  %v748_v38 = vadd.s32 80, %v3802_v19 }
  0x96   : > { %2957 = vmatpush3.bf16.msra.mxu0 %v3152_v9  ;;  %vm775_vm4 = vcmp.gt.s32.totalorder %v3812_v25, %v755_v23  ;;  %v756_v28 = vadd.s32 %v3806_v21, %v739_v24  ;;  %v761_v31 = vadd.s32 %v3806_v21, %v744_v26  ;;  %v749_v46 = vadd.s32 88, %v3802_v19  ;;  %v3913_v24 = vld [vmem:[#allocation2] sm:$0xff] }
  0x97   : > { %v759_v34 = vadd.s32 %v3806_v21, %v742_v29  ;;  %v762_v41 = vadd.s32 %v3806_v21, %v745_v35  ;;  %v760_v42 = vadd.s32 %v3806_v21, %v743_v36  ;;  %v765_v45 = vadd.s32 %v3806_v21, %v748_v38  ;;  %v3928_v29 = vld [vmem:[#allocation2 + $0x8] sm:$0xff]  ;;  %v3938_v36 = vld [vmem:[#allocation2 + $0x20] sm:$0xff] }
  0x98   : > { %vm776_vm5 = vcmp.gt.s32.totalorder %v3812_v25, %v756_v28  ;;  %vm781_vm6 = vcmp.gt.s32.totalorder %v3812_v25, %v761_v31  ;;  %v746_v47 = vadd.s32 64, %v3802_v19  ;;  %v747_v50 = vadd.s32 72, %v3802_v19 }
  0x99   : > { %2959 = vmatmul.mubr.msk.bf16.vlgmr.msra.gmra.mxu0 %vm615_vm3, %v3154_v11  ;;  %vm779_vm7 = vcmp.gt.s32.totalorder %v3812_v25, %v759_v34  ;;  %vm782_vm8 = vcmp.gt.s32.totalorder %v3812_v25, %v762_v41  ;;  %vm780_vm9 = vcmp.gt.s32.totalorder %v3812_v25, %v760_v42  ;;  %vm785_vm10 = vcmp.gt.s32.totalorder %v3812_v25, %v765_v45  ;;  %v3936_v34 = vld [vmem:[#allocation2 + $0x30] sm:$0xff] }
  0x9a   : > { %2962 = vmatprep.mubr.msk.bf16.mxu0 %vm615_vm3, %v3155_v12  ;;  %v766_v52 = vadd.s32 %v3806_v21, %v749_v46  ;;  %v763_v53 = vadd.s32 %v3806_v21, %v746_v47  ;;  %v764_v57 = vadd.s32 %v3806_v21, %v747_v50  ;;  %v740_v58 = vadd.s32 16, %v3802_v19  ;;  %v3961_v47 = vld [vmem:[#allocation2 + $0x38] sm:$0xff] }
  0x9b   : > { %v741_v61 = vadd.s32 24, %v3802_v19  ;;  %v750_v62 = vadd.s32 96, %v3802_v19  ;;  %v751_v1 = vadd.s32 104, %v3802_v19  ;;  %v752_v7 = vadd.s32 112, %v3802_v19 }
  0x9c   : > { %vm786_vm11 = vcmp.gt.s32.totalorder %v3812_v25, %v766_v52  ;;  %vm783_vm12 = vcmp.gt.s32.totalorder %v3812_v25, %v763_v53  ;;  %vm784_vm13 = vcmp.gt.s32.totalorder %v3812_v25, %v764_v57  ;;  %v757_v0 = vadd.s32 %v3806_v21, %v740_v58 }
  0x9d   : > { %v758_v5 = vadd.s32 %v3806_v21, %v741_v61  ;;  %v767_v6 = vadd.s32 %v3806_v21, %v750_v62  ;;  %v768_v10 = vadd.s32 %v3806_v21, %v751_v1  ;;  %v753_v11 = vadd.s32 120, %v3802_v19 }
  0x9e   : > { %vm777_vm14 = vcmp.gt.s32.totalorder %v3812_v25, %v757_v0  ;;  %v3509_v23 = vmov 0  }
  0x9f   : > { %vm778_vm15 = vcmp.gt.s32.totalorder %v3812_v25, %v758_v5  ;;  %vm787_vm0 = vcmp.gt.s32.totalorder %v3812_v25, %v767_v6  ;;  %vm788_vm1 = vcmp.gt.s32.totalorder %v3812_v25, %v768_v10  ;;  %3150 = vset.pattern.permute.xlu1 %v3509_v23  ;;  %3149 = vset.pattern.permute.xlu0 %v3509_v23 }
  0xa1   : > { %2963 = vmatmul.mubr.msk.bf16.gmra.mxu0 %vm615_vm3, %v3156_v13  ;;  %v769_v13 = vadd.s32 %v3806_v21, %v752_v7 }
  0xa2   : > { %2966 = vmatprep.mubr.msk.bf16.mxu0 %vm615_vm3, %v3157_v14 }
  0xa3   : > { %vm789_vm2 = vcmp.gt.s32.totalorder %v3812_v25, %v769_v13 }
  0xa9   : > { %2967 = vmatmul.mubr.msk.bf16.gmra.mxu0 %vm615_vm3, %v3158_v15 }
  0xaa   : > { %2970 = vmatprep.mubr.msk.bf16.mxu0 %vm615_vm3, %v3159_v16  ;;  %v770_v16 = vadd.s32 %v3806_v21, %v753_v11 }
  0xb1   : > { %2971 = vmatmul.mubr.msk.bf16.gmra.mxu0 %vm615_vm3, %v3160_v17 }
 0x159   : > { %v3815_v27 = vpop.f32.mrf.mxu0 }
 0x15a   : > { %v3890_v14 = vsel %vm777_vm14, -2.3819763e+38, %v3815_v27 }
 0x15b   : > { %v674_v30 = vpop.f32.mrf.mxu0 }
 0x15c   : > { %v3821_v32 = vsel %vm775_vm4, -2.3819763e+38, %v674_v30  ;;  %vm790_vm4 = vcmp.gt.s32.totalorder %v3812_v25, %v770_v16 }
 0x15d   : > { %807 = vmax.xlane.f32.xlu0 %v3821_v32  ;;  %v3824_v33 = vpop.f32.mrf.mxu0 }
 0x15e   : > { %v3896_v17 = vsel %vm778_vm15, -2.3819763e+38, %v3824_v33 }
 0x15f   : > { %v677_v37 = vpop.f32.mrf.mxu0 }
 0x160   : > { %v3832_v39 = vsel %vm776_vm5, -2.3819763e+38, %v677_v37  ;;  %vm1111_vm5 = vcmask 7168  }
 0x161   : > { %809 = vmax.xlane.f32.xlu1 %v3832_v39  ;;  %v2964_v40 = vpop.f32.mrf.mxu0 }
 0x162   : > { %v3838_v43 = vsel %vm781_vm6, -2.3819763e+38, %v2964_v40 }
 0x163   : > { %v690_v44 = vpop.f32.mrf.mxu0 }
 0x164   : > { %v3843_v48 = vsel %vm779_vm7, -2.3819763e+38, %v690_v44 }
 0x165   : > { %819 = vmax.xlane.f32.xlu1 %v3838_v43  ;;  %815 = vmax.xlane.f32.xlu0 %v3843_v48  ;;  %v2965_v49 = vpop.f32.mrf.mxu0 }
 0x166   : > { %v3853_v54 = vsel %vm782_vm8, -2.3819763e+38, %v2965_v49 }
 0x167   : > { %v693_v51 = vpop.f32.mrf.mxu0 }
 0x168   : > { %v3855_v55 = vsel %vm780_vm9, -2.3819763e+38, %v693_v51  ;;  %v3968_v51 = vld [vmem:[#allocation2 + $0x28] sm:$0xff] }
 0x169   : > { %821 = vmax.xlane.f32.xlu1 %v3853_v54  ;;  %817 = vmax.xlane.f32.xlu0 %v3855_v55  ;;  %v2968_v56 = vpop.f32.mrf.mxu0 }
 0x16a   : > { %v3861_v59 = vsel %vm785_vm10, -2.3819763e+38, %v2968_v56 }
 0x16b   : > { %v706_v60 = vpop.f32.mrf.mxu0 }
 0x16c   : > { %v3873_v3 = vsel %vm783_vm12, -2.3819763e+38, %v706_v60 }
 0x16d   : > { %827 = vmax.xlane.f32.xlu0 %v3861_v59  ;;  %v2969_v63 = vpop.f32.mrf.mxu0 }
 0x16e   : > { %v3871_v2 = vsel %vm786_vm11, -2.3819763e+38, %v2969_v63 }
 0x16f   : > { %829 = vmax.xlane.f32.xlu1 %v3871_v2  ;;  %v709_v4 = vpop.f32.mrf.mxu0 }
 0x170   : > { %v3879_v8 = vsel %vm784_vm13, -2.3819763e+38, %v709_v4 }
 0x171   : > { %823 = vmax.xlane.f32.xlu0 %v3873_v3  ;;  %v2972_v9 = vpop.f32.mrf.mxu0 }
 0x172   : > { %v3906_v22 = vsel %vm789_vm2, -2.3819763e+38, %v2972_v9  ;;  %v4000_v9 = vld [vmem:[#allocation2 + $0x58] sm:$0xff] }
 0x173   : > { %825 = vmax.xlane.f32.xlu1 %v3879_v8  ;;  %v722_v12 = vpop.f32.mrf.mxu0 }
 0x174   : > { %v3898_v18 = vsel %vm787_vm0, -2.3819763e+38, %v722_v12 }
 0x175   : > { %811 = vmax.xlane.f32.xlu0 %v3890_v14  ;;  %v2973_v15 = vpop.f32.mrf.mxu0 }
 0x176   : > { %v3909_v21 = vsel %vm790_vm4, -2.3819763e+38, %v2973_v15 }
 0x177   : > { %813 = vmax.xlane.f32.xlu1 %v3896_v17  ;;  %v725_v19 = vpop.f32.mrf.mxu0 }
 0x178   : > { %v3902_v20 = vsel %vm788_vm1, -2.3819763e+38, %v725_v19 }
 0x179   : > { %831 = vmax.xlane.f32.xlu0 %v3898_v18 }
 0x17b   : > { %833 = vmax.xlane.f32.xlu1 %v3902_v20 }
 0x17d   : > { %835 = vmax.xlane.f32.xlu0 %v3906_v22 }
 0x17f   : > { %837 = vmax.xlane.f32.xlu1 %v3909_v21 }
 0x1e6   : > { %v808_v26 = vpop.xlane.xlu0 %807 }
 0x1e7   : > { %v839_v27 = vsub.f32 %v3821_v32, %v808_v26  ;;  %v3917_v25 = vmax.f32 %v3913_v24, %v808_v26  ;;  %1538 = vst.msk [vmem:[%s3920_s26] sm:$0xff] %vm1111_vm5, %v808_v26 }
 0x1e9   : > { %1521 = vst.msk [vmem:[#allocation2] sm:$0xff] %vm1111_vm5, %v3917_v25  ;;  %v855_v30 = vmul.f32 1.442695, %v839_v27 }
 0x1ea   : > { %v810_v31 = vpop.xlane.xlu1 %809 }
 0x1eb   : > { %v840_v32 = vsub.f32 %v3832_v39, %v810_v31  ;;  %1539 = vst.msk [vmem:[%s3920_s26 + $0x8] sm:$0xff] %vm1111_vm5, %v810_v31  ;;  %v3934_v33 = vmax.f32 %v3928_v29, %v810_v31  ;;  %3169 = vpow2.f32 %v855_v30  ;;  %v967_v39 = vsub.f32 %v808_v26, %v3917_v25 }
 0x1ed   : > { %v857_v35 = vmul.f32 1.442695, %v840_v32  ;;  %1522 = vst.msk [vmem:[#allocation2 + $0x8] sm:$0xff] %vm1111_vm5, %v3934_v33  ;;  %v983_v53 = vmul.f32 1.442695, %v967_v39  ;;  %v968_v56 = vsub.f32 %v810_v31, %v3934_v33 }
 0x1ee   : > { %v820_v38 = vpop.xlane.xlu1 %819  ;;  %v816_v40 = vpop.xlane.xlu0 %815 }
 0x1ef   : > { %3171 = vpow2.f32 %v857_v35  ;;  %v3946_v41 = vmax.f32 %v3936_v34, %v820_v38  ;;  %1544 = vst.msk [vmem:[%s3920_s26 + $0x30] sm:$0xff] %vm1111_vm5, %v820_v38  ;;  %1542 = vst.msk [vmem:[%s3920_s26 + $0x20] sm:$0xff] %vm1111_vm5, %v816_v40  ;;  %v845_v42 = vsub.f32 %v3838_v43, %v820_v38  ;;  %v3954_v44 = vmax.f32 %v3938_v36, %v816_v40  ;;  %v4038_v35 = vld [vmem:[#allocation2 + $0x40] sm:$0xff] }
 0x1f0   : > { %v843_v61 = vsub.f32 %v3843_v48, %v816_v40  ;;  %v3989_v48 = vld [vmem:[#allocation2 + $0x50] sm:$0xff] }
 0x1f1   : > { %v973_v46 = vsub.f32 %v820_v38, %v3946_v41  ;;  %1527 = vst.msk [vmem:[#allocation2 + $0x30] sm:$0xff] %vm1111_vm5, %v3946_v41  ;;  %v971_v43 = vsub.f32 %v816_v40, %v3954_v44  ;;  %1525 = vst.msk [vmem:[#allocation2 + $0x20] sm:$0xff] %vm1111_vm5, %v3954_v44  ;;  %v867_v60 = vmul.f32 1.442695, %v845_v42  ;;  %v4040_v38 = vld [vmem:[#allocation2 + $0x48] sm:$0xff] }
 0x1f2   : > { %v822_v50 = vpop.xlane.xlu1 %821  ;;  %v818_v52 = vpop.xlane.xlu0 %817  ;;  %v863_v10 = vmul.f32 1.442695, %v843_v61 }
 0x1f3   : > { %v995_v57 = vmul.f32 1.442695, %v973_v46  ;;  %v846_v58 = vsub.f32 %v3853_v54, %v822_v50  ;;  %1545 = vst.msk [vmem:[%s3920_s26 + $0x38] sm:$0xff] %vm1111_vm5, %v822_v50  ;;  %1543 = vst.msk [vmem:[%s3920_s26 + $0x28] sm:$0xff] %vm1111_vm5, %v818_v52  ;;  %v3978_v62 = vmax.f32 %v3961_v47, %v822_v50  ;;  %v991_v63 = vmul.f32 1.442695, %v971_v43 }
 0x1f4   : > { %v844_v0 = vsub.f32 %v3855_v55, %v818_v52  ;;  %v3982_v1 = vmax.f32 %v3968_v51, %v818_v52  ;;  %v985_v55 = vmul.f32 1.442695, %v968_v56  ;;  %v4050_v46 = vld [vmem:[#allocation2 + $0x10] sm:$0xff] }
 0x1f5   : > { %3173 = vpow2.f32 %v995_v57  ;;  %v869_v54 = vmul.f32 1.442695, %v846_v58  ;;  %v974_v5 = vsub.f32 %v822_v50, %v3978_v62  ;;  %1528 = vst.msk [vmem:[#allocation2 + $0x38] sm:$0xff] %vm1111_vm5, %v3978_v62 }
 0x1f6   : > { %v3991_v6 = vpop.xlane.xlu0 %827  ;;  %3175 = vpow2.f32 %v983_v53  ;;  %1526 = vst.msk [vmem:[#allocation2 + $0x28] sm:$0xff] %vm1111_vm5, %v3982_v1  ;;  %v865_v12 = vmul.f32 1.442695, %v844_v0  ;;  %v972_v13 = vsub.f32 %v818_v52, %v3982_v1 }
 0x1f7   : > { %1548 = vst.msk [vmem:[%s3920_s26 + $0x50] sm:$0xff] %vm1111_vm5, %v3991_v6  ;;  %3177 = vpow2.f32 %v867_v60  ;;  %v4008_v15 = vmax.f32 %v3989_v48, %v3991_v6  ;;  %v997_v16 = vmul.f32 1.442695, %v974_v5  ;;  %v849_v19 = vsub.f32 %v3861_v59, %v3991_v6 }
 0x1f8   : > { %v4002_v11 = vpop.xlane.xlu1 %829  ;;  %3179 = vpow2.f32 %v991_v63  ;;  %v4021_v27 = vpop.eup %3169  ;;  %v993_v42 = vmul.f32 1.442695, %v972_v13  ;;  %v3162_v63 = vld [vmem:[%s3702_s17 + $0x30] sm:$0xff]   ;;  %v4106_v13 = vld [vmem:[#allocation2 + $0x60] sm:$0xff] }
 0x1f9   : > { %1549 = vst.msk [vmem:[%s3920_s26 + $0x58] sm:$0xff] %vm1111_vm5, %v4002_v11  ;;  %3181 = vpow2.f32 %v869_v54  ;;  %v4017_v23 = vmax.f32 %v4000_v9, %v4002_v11  ;;  %1531 = vst.msk [vmem:[#allocation2 + $0x50] sm:$0xff] %vm1111_vm5, %v4008_v15  ;;  %v850_v59 = vsub.f32 %v3871_v2, %v4002_v11  ;;  %v3161_v2 = vld [vmem:[%s3702_s17 + $0x38] sm:$0xff]   ;;  %v875_v43 = vmul.f32 1.442695, %v849_v19 }
 0x1fa   : > { %v4019_v26 = vpop.xlane.xlu0 %823  ;;  %3183 = vpow2.f32 %v985_v55  ;;  %v977_v50 = vsub.f32 %v3991_v6, %v4008_v15  ;;  %3006 = vmatprep.subr.bf16.mxu1 %v3161_v2  ;;  %2974 = vmatprep.subr.bf16.mxu0 %v3161_v2  ;;  %v3164_v6 = vld [vmem:[%s3702_s17 + $0x20] sm:$0xff]  }
 0x1fb   : > { %1546 = vst.msk [vmem:[%s3920_s26 + $0x40] sm:$0xff] %vm1111_vm5, %v4019_v26  ;;  %3185 = vpow2.f32 %v863_v10  ;;  %1532 = vst.msk [vmem:[#allocation2 + $0x58] sm:$0xff] %vm1111_vm5, %v4017_v23  ;;  %v877_v53 = vmul.f32 1.442695, %v850_v59  ;;  %v4063_v56 = vmax.f32 %v4038_v35, %v4019_v26  ;;  %3014 = vmatpush3.bf16.msra.mxu1 %v3161_v2  ;;  %2975 = vmatpush3.bf16.msra.mxu0 %v3161_v2  ;;  %v3163_v59 = vld [vmem:[%s3702_s17 + $0x28] sm:$0xff]  }
 0x1fc   : > { %v4032_v31 = vpop.eup %3171  ;;  %v4042_v40 = vpop.xlane.xlu1 %825  ;;  %3187 = vpow2.f32 %v865_v12  ;;  %v847_v58 = vsub.f32 %v3873_v3, %v4019_v26  ;;  %v1003_v3 = vmul.f32 1.442695, %v977_v50  ;;  %3007 = vmatprep.subr.bf16.mxu1 %v3162_v63  ;;  %2976 = vmatprep.subr.bf16.mxu0 %v3162_v63  ;;  %v3165_v12 = vld [vmem:[%s3702_s17 + $0x18] sm:$0xff]  }
 0x1fd   : > { %v2806_v39 = vpack.c.bf16 %v4032_v31, %v4021_v27  ;;  %1547 = vst.msk [vmem:[%s3920_s26 + $0x48] sm:$0xff] %vm1111_vm5, %v4042_v40  ;;  %3189 = vpow2.f32 %v997_v16  ;;  %v4067_v57 = vmax.f32 %v4040_v38, %v4042_v40  ;;  %1529 = vst.msk [vmem:[#allocation2 + $0x40] sm:$0xff] %vm1111_vm5, %v4063_v56  ;;  %v848_v54 = vsub.f32 %v3879_v8, %v4042_v40  ;;  %v4098_v8 = vld [vmem:[#allocation2 + $0x18] sm:$0xff] }
 0x1fe   : > { %v4054_v52 = vpop.xlane.xlu0 %811  ;;  %3191 = vpow2.f32 %v993_v42  ;;  %v975_v5 = vsub.f32 %v4019_v26, %v4063_v56  ;;  %v871_v19 = vmul.f32 1.442695, %v847_v58 }
 0x1ff   : > { %2807 = vst [vmem:[%s4058_s29] sm:$0xff] %v2806_v39   ;;  %1540 = vst.msk [vmem:[%s3920_s26 + $0x10] sm:$0xff] %vm1111_vm5, %v4054_v52  ;;  %v4076_v60 = vmax.f32 %v4050_v46, %v4054_v52  ;;  %3193 = vpow2.f32 %v875_v43  ;;  %3015 = vmatpush3.bf16.msra.mxu1 %v3162_v63  ;;  %2977 = vmatpush3.bf16.msra.mxu0 %v3162_v63  ;;  %v978_v39 = vsub.f32 %v4002_v11, %v4017_v23 }
 0x200   : > { %v4078_v61 = vpop.xlane.xlu1 %813  ;;  %1530 = vst.msk [vmem:[#allocation2 + $0x48] sm:$0xff] %vm1111_vm5, %v4067_v57  ;;  %3195 = vpow2.f32 %v877_v53  ;;  %v873_v42 = vmul.f32 1.442695, %v848_v54  ;;  %v999_v53 = vmul.f32 1.442695, %v975_v5  ;;  %v841_v58 = vsub.f32 %v3890_v14, %v4054_v52  ;;  %3008 = vmatprep.subr.bf16.mxu1 %v3163_v59  ;;  %2978 = vmatprep.subr.bf16.mxu0 %v3163_v59  ;;  %v4147_v14 = vld [vmem:[#allocation2 + $0x68] sm:$0xff] }
 0x201   : > { %1541 = vst.msk [vmem:[%s3920_s26 + $0x18] sm:$0xff] %vm1111_vm5, %v4078_v61  ;;  %1523 = vst.msk [vmem:[#allocation2 + $0x10] sm:$0xff] %vm1111_vm5, %v4076_v60  ;;  %v4123_v43 = vmax.f32 %v4098_v8, %v4078_v61  ;;  %3197 = vpow2.f32 %v1003_v3  ;;  %v842_v30 = vsub.f32 %v3896_v17, %v4078_v61  ;;  %v1005_v4 = vmul.f32 1.442695, %v978_v39  ;;  %v4180_v39 = vld [vmem:[#allocation2 + $0x70] sm:$0xff] }
 0x202   : > { %v4100_v55 = vpop.xlane.xlu0 %831  ;;  %v4102_v10 = vpop.eup %3173  ;;  %3199 = vpow2.f32 %v871_v19  ;;  %v976_v32 = vsub.f32 %v4042_v40, %v4067_v57  ;;  %v859_v7 = vmul.f32 1.442695, %v841_v58  ;;  %v4187_v40 = vld [vmem:[#allocation2 + $0x78] sm:$0xff]  ;;  %v969_v28 = vsub.f32 %v4054_v52, %v4076_v60 }
 0x203   : > { %1550 = vst.msk [vmem:[%s3920_s26 + $0x60] sm:$0xff] %vm1111_vm5, %v4100_v55  ;;  %v4111_v16 = vpop.eup %3175  ;;  %1272 = vperm.xlu1 %3150, %v4102_v10   ;;  %v4134_v63 = vmax.f32 %v4106_v13, %v4100_v55  ;;  %1524 = vst.msk [vmem:[#allocation2 + $0x18] sm:$0xff] %vm1111_vm5, %v4123_v43  ;;  %3016 = vmatpush3.bf16.msra.mxu1 %v3163_v59  ;;  %3201 = vpow2.f32 %v873_v42  ;;  %v970_v49 = vsub.f32 %v4078_v61, %v4123_v43 }
 0x204   : > { %v4114_v26 = vpop.xlane.xlu1 %833  ;;  %v4117_v2 = vpop.eup %3177  ;;  %2979 = vmatpush3.bf16.msra.mxu0 %v3163_v59  ;;  %3203 = vpow2.f32 %v999_v53  ;;  %3009 = vmatprep.subr.bf16.mxu1 %v3164_v6  ;;  %v861_v53 = vmul.f32 1.442695, %v842_v30  ;;  %v851_v58 = vsub.f32 %v3898_v18, %v4100_v55 }
 0x205   : > { %1551 = vst.msk [vmem:[%s3920_s26 + $0x68] sm:$0xff] %vm1111_vm5, %v4114_v26  ;;  %v4128_v50 = vpop.eup %3179  ;;  %1533 = vst.msk [vmem:[#allocation2 + $0x60] sm:$0xff] %vm1111_vm5, %v4134_v63  ;;  %v4178_v59 = vmax.f32 %v4147_v14, %v4114_v26  ;;  %2980 = vmatprep.subr.bf16.mxu0 %v3164_v6  ;;  %3205 = vpow2.f32 %v1005_v4  ;;  %v989_v30 = vmul.f32 1.442695, %v970_v49  ;;  %v852_v3 = vsub.f32 %v3902_v20, %v4114_v26 }
 0x206   : > { %v4136_v11 = vpop.xlane.xlu0 %835  ;;  %v4138_v54 = vpop.eup %3181  ;;  %1262 = vperm.xlu0 %3149, %v4128_v50   ;;  %3207 = vpow2.f32 %v859_v7  ;;  %v987_v4 = vmul.f32 1.442695, %v969_v28 }
 0x207   : > { %1552 = vst.msk [vmem:[%s3920_s26 + $0x70] sm:$0xff] %vm1111_vm5, %v4136_v11  ;;  %v4152_v5 = vpop.eup %3183  ;;  %v2821_v17 = vpack.c.bf16 %v4138_v54, %v4117_v2  ;;  %1242 = vperm.xlu1 %3150, %v4111_v16   ;;  %3017 = vmatpush3.bf16.msra.mxu1 %v3164_v6  ;;  %1534 = vst.msk [vmem:[#allocation2 + $0x68] sm:$0xff] %vm1111_vm5, %v4178_v59  ;;  %v4202_v37 = vmax.f32 %v4180_v39, %v4136_v11  ;;  %3209 = vpow2.f32 %v861_v53 }
 0x208   : > { %v4161_v0 = vpop.xlane.xlu1 %837  ;;  %v4164_v45 = vpop.eup %3185  ;;  %2981 = vmatpush3.bf16.msra.mxu0 %v3164_v6  ;;  %3010 = vmatprep.subr.bf16.mxu1 %v3165_v12  ;;  %v980_v20 = vsub.f32 %v4114_v26, %v4178_v59  ;;  %v3166_v26 = vld [vmem:[%s3702_s17 + $0x10] sm:$0xff]   ;;  %3211 = vpow2.f32 %v989_v30  ;;  %v979_v53 = vsub.f32 %v4100_v55, %v4134_v63  ;;  %v853_v52 = vsub.f32 %v3906_v22, %v4136_v11  ;;  %v3167_v55 = vld [vmem:[%s3702_s17 + $0x8] sm:$0xff]  }
 0x209   : > { %1553 = vst.msk [vmem:[%s3920_s26 + $0x78] sm:$0xff] %vm1111_vm5, %v4161_v0  ;;  %v4171_v19 = vpop.eup %3187  ;;  %2909 = vst [vmem:[%s4058_s29 + $0x18] sm:$0xff] %v2821_v17   ;;  %v1001_v17 = vmul.f32 1.442695, %v976_v32  ;;  %v4210_v6 = vmax.f32 %v4187_v40, %v4161_v0  ;;  %2982 = vmatprep.subr.bf16.mxu0 %v3165_v12  ;;  %v879_v32 = vmul.f32 1.442695, %v851_v58 }
 0x20a   : > { %v4182_v61 = vpop.eup %3189  ;;  %v2816_v42 = vpack.c.bf16 %v4171_v19, %v4164_v45  ;;  %1247 = vperm.xlu0 %3149, %v4152_v5   ;;  %1535 = vst.msk [vmem:[#allocation2 + $0x70] sm:$0xff] %vm1111_vm5, %v4202_v37  ;;  %v881_v58 = vmul.f32 1.442695, %v852_v3  ;;  %v1007_v28 = vmul.f32 1.442695, %v979_v53 }
 0x20b   : > { %4847 = vst [vmem:[#allocation25_spill] sm:$0xff] %v4182_v61  ;;  %1277 = vperm.xlu1 %3150, %v4182_v61   ;;  %v4204_v18 = vpop.eup %3191  ;;  %3018 = vmatpush3.bf16.msra.mxu1 %v3165_v12  ;;  %1536 = vst.msk [vmem:[#allocation2 + $0x78] sm:$0xff] %vm1111_vm5, %v4210_v6  ;;  %3213 = vpow2.f32 %v1001_v17  ;;  %v982_v22 = vsub.f32 %v4161_v0, %v4210_v6  ;;  %v883_v30 = vmul.f32 1.442695, %v853_v52 }
 0x20c   : > { %2908 = vst [vmem:[%s4058_s29 + $0x10] sm:$0xff] %v2816_v42   ;;  %4848 = vst [vmem:[#allocation26_spill] sm:$0xff] %v4204_v18  ;;  %v4212_v49 = vpop.eup %3193  ;;  %2983 = vmatpush3.bf16.msra.mxu0 %v3165_v12  ;;  %3011 = vmatprep.subr.bf16.mxu1 %v3166_v26  ;;  %v1009_v12 = vmul.f32 1.442695, %v980_v20  ;;  %3215 = vpow2.f32 %v879_v32 }
 0x20d   : > { %v4220_v7 = vpop.eup %3195  ;;  %2984 = vmatprep.subr.bf16.mxu0 %v3166_v26  ;;  %3217 = vpow2.f32 %v881_v58 }
 0x20e   : > { %v2831_v42 = vpack.c.bf16 %v4220_v7, %v4212_v49  ;;  %v4234_v61 = vpop.eup %3197  ;;  %3219 = vpow2.f32 %v987_v4  ;;  %v1013_v4 = vmul.f32 1.442695, %v982_v22 }
 0x20f   : > { %1267 = vperm.xlu1 %3150, %v4204_v18   ;;  %v854_v18 = vsub.f32 %v3909_v21, %v4161_v0  ;;  %3019 = vmatpush3.bf16.msra.mxu1 %v3166_v26  ;;  %v4241_v3 = vpop.eup %3199  ;;  %v981_v21 = vsub.f32 %v4136_v11, %v4202_v37  ;;  %3221 = vpow2.f32 %v1009_v12  ;;  %v3168_v0 = vld [vmem:[%s3702_s17] sm:$0xff]  }
 0x210   : > { %2911 = vst [vmem:[%s4058_s29 + $0x28] sm:$0xff] %v2831_v42   ;;  %2985 = vmatpush3.bf16.msra.mxu0 %v3166_v26  ;;  %v4245_v17 = vpop.eup %3201  ;;  %3012 = vmatprep.subr.bf16.mxu1 %v3167_v55  ;;  %3223 = vpow2.f32 %v1007_v28 }
 0x211   : > { %2986 = vmatprep.subr.bf16.mxu0 %v3167_v55  ;;  %v4249_v20 = vpop.eup %3203  ;;  %v2826_v32 = vpack.c.bf16 %v4245_v17, %v4241_v3  ;;  %v885_v26 = vmul.f32 1.442695, %v854_v18  ;;  %3225 = vpow2.f32 %v883_v30  ;;  %v1011_v11 = vmul.f32 1.442695, %v981_v21 }
 0x212   : > { %v4256_v52 = vpop.eup %3205 }
 0x213   : > { %1292 = vperm.xlu1 %3150, %v4234_v61   ;;  %3020 = vmatpush3.bf16.msra.mxu1 %v3167_v55  ;;  %2910 = vst [vmem:[%s4058_s29 + $0x20] sm:$0xff] %v2826_v32   ;;  %4849 = vst [vmem:[#allocation27_spill] sm:$0xff] %v4256_v52  ;;  %v4258_v42 = vpop.eup %3207  ;;  %3227 = vpow2.f32 %v885_v26 }
 0x214   : > { %2987 = vmatpush3.bf16.msra.mxu0 %v3167_v55  ;;  %3013 = vmatprep.subr.bf16.mxu1 %v3168_v0  ;;  %v4260_v18 = vpop.eup %3209  ;;  %3229 = vpow2.f32 %v1013_v4 }
 0x215   : > { %2988 = vmatprep.subr.bf16.mxu0 %v3168_v0  ;;  %v2811_v53 = vpack.c.bf16 %v4260_v18, %v4258_v42  ;;  %v4265_v58 = vpop.eup %3211  ;;  %3231 = vpow2.f32 %v1011_v11 }
 0x216   : > { %1257 = vperm.xlu0 %3149, %v4265_v58  }
 0x217   : > { %1282 = vperm.xlu1 %3150, %v4249_v20   ;;  %3021 = vmatpush3.bf16.msra.mxu1 %v3168_v0  ;;  %2907 = vst [vmem:[%s4058_s29 + $0x8] sm:$0xff] %v2811_v53  }
 0x218   : > { %2989 = vmatpush3.bf16.msra.mxu0 %v3168_v0  ;;  %v4267_v12 = vpop.eup %3213 }
 0x219   : > { %4850 = vst [vmem:[#allocation28_spill] sm:$0xff] %v4267_v12  ;;  %v4272_v55 = vpop.eup %3215 }
 0x21a   : > { %v4274_v28 = vpop.eup %3217 }
 0x21b   : > { %1297 = vperm.xlu1 %3150, %v4256_v52   ;;  %v4276_v22 = vpop.eup %3219  ;;  %v2836_v30 = vpack.c.bf16 %v4274_v28, %v4272_v55 }
 0x21c   : > { %v4280_v21 = vpop.eup %3221 }
 0x21d   : > { %4851 = vst [vmem:[#allocation29_spill] sm:$0xff] %v4280_v21  ;;  %2912 = vst [vmem:[%s4058_s29 + $0x30] sm:$0xff] %v2836_v30   ;;  %1307 = vperm.xlu0 %3149, %v4280_v21   ;;  %v4285_v32 = vpop.eup %3223  ;;  %v4855_v30 = vsub.f32 %v3913_v24, %v3917_v25  ;;  %v4859_v24 = vsub.f32 %v3968_v51, %v3982_v1  ;;  %v4863_v51 = vsub.f32 %v4040_v38, %v4067_v57 }
 0x21e   : > { %4852 = vst [vmem:[#allocation30_spill] sm:$0xff] %v4285_v32  ;;  %v4287_v26 = vpop.eup %3225  ;;  %v4866_v38 = vsub.f32 %v3989_v48, %v4008_v15  ;;  %v4868_v48 = vsub.f32 %v4106_v13, %v4134_v63  ;;  %v4870_v13 = vsub.f32 %v4180_v39, %v4202_v37 }
 0x21f   : > { %1287 = vperm.xlu1 %3150, %v4267_v12   ;;  %v945_v25 = vmul.f32 1.442695, %v4859_v24  ;;  %v953_v1 = vmul.f32 1.442695, %v4863_v51 }
 0x220   : > { %v4289_v0 = vpop.eup %3227  ;;  %v955_v57 = vmul.f32 1.442695, %v4866_v38  ;;  %v959_v15 = vmul.f32 1.442695, %v4868_v48  ;;  %v963_v63 = vmul.f32 1.442695, %v4870_v13 }
 0x221   : > { %v2841_v4 = vpack.c.bf16 %v4289_v0, %v4287_v26  ;;  %v4294_v11 = vpop.eup %3229 }
 0x222   : > { %4853 = vst [vmem:[#allocation31_spill] sm:$0xff] %v4294_v11  ;;  %v4296_v53 = vpop.eup %3231  ;;  %1317 = vperm.xlu0 %3149, %v4294_v11   ;;  %v4856_v11 = vsub.f32 %v3928_v29, %v3934_v33  ;;  %v4860_v29 = vsub.f32 %v3938_v36, %v3954_v44  ;;  %v4864_v36 = vsub.f32 %v4038_v35, %v4063_v56 }
 0x223   : > { %1252 = vperm.xlu1 %3150, %v4276_v22   ;;  %4854 = vst [vmem:[#allocation32_spill] sm:$0xff] %v4296_v53  ;;  %2913 = vst [vmem:[%s4058_s29 + $0x38] sm:$0xff] %v2841_v4   ;;  %v935_v4 = vmul.f32 1.442695, %v4855_v30 }
 0x224   : > { %v937_v21 = vmul.f32 1.442695, %v4856_v11  ;;  %v943_v33 = vmul.f32 1.442695, %v4860_v29  ;;  %v4861_v11 = vsub.f32 %v3961_v47, %v3978_v62  ;;  %v951_v44 = vmul.f32 1.442695, %v4864_v36 }
 0x225   : > { %3233 = vpow2.f32 %v935_v4 }
 0x226   : > { %3235 = vpow2.f32 %v937_v21 }
 0x227   : > { %1302 = vperm.xlu1 %3150, %v4285_v32   ;;  %v4858_v32 = vsub.f32 %v4050_v46, %v4076_v60 }
 0x229   : > { %v939_v12 = vmul.f32 1.442695, %v4858_v32 }
 0x22b   : > { %1312 = vperm.xlu1 %3150, %v4296_v53   ;;  %v4857_v53 = vsub.f32 %v4098_v8, %v4123_v43  ;;  %v949_v8 = vmul.f32 1.442695, %v4861_v11  ;;  %v4862_v43 = vsub.f32 %v3936_v34, %v3946_v41  ;;  %v4865_v34 = vsub.f32 %v4000_v9, %v4017_v23 }
 0x22c   : > { %v4867_v9 = vsub.f32 %v4147_v14, %v4178_v59  ;;  %v4869_v14 = vsub.f32 %v4187_v40, %v4210_v6 }
 0x22d   : > { %v941_v52 = vmul.f32 1.442695, %v4857_v53  ;;  %v947_v46 = vmul.f32 1.442695, %v4862_v43  ;;  %v957_v41 = vmul.f32 1.442695, %v4865_v34 }
 0x22e   : > { %v961_v23 = vmul.f32 1.442695, %v4867_v9  ;;  %v965_v59 = vmul.f32 1.442695, %v4869_v14 }
 0x22f   : > { %3237 = vpow2.f32 %v941_v52 }
 0x230   : > { %3239 = vpow2.f32 %v939_v12 }
 0x231   : > { %3241 = vpow2.f32 %v945_v25 }
 0x232   : > { %3243 = vpow2.f32 %v943_v33  ;;  %v4344_v60 = vpop.eup %3233 }
 0x233   : > { %3245 = vpow2.f32 %v949_v8  ;;  %v4349_v47 = vpop.eup %3235 }
 0x234   : > { %3247 = vpow2.f32 %v947_v46 }
 0x235   : > { %3249 = vpow2.f32 %v953_v1 }
 0x236   : > { %3251 = vpow2.f32 %v951_v44 }
 0x237   : > { %3253 = vpow2.f32 %v957_v41 }
 0x238   : > { %3255 = vpow2.f32 %v955_v57 }
 0x239   : > { %3257 = vpow2.f32 %v961_v23 }
 0x23a   : > { %3259 = vpow2.f32 %v959_v15 }
 0x23b   : > { %3261 = vpow2.f32 %v965_v59 }
 0x23c   : > { %v4356_v62 = vpop.eup %3237  ;;  %3263 = vpow2.f32 %v963_v63 }
 0x23d   : > { %v4361_v56 = vpop.eup %3239 }
 0x23e   : > { %v4368_v12 = vpop.eup %3241 }
 0x23f   : > { %v4373_v32 = vpop.eup %3243 }
 0x240   : > { %v4381_v4 = vpop.eup %3245 }
 0x241   : > { %1049 = vadd.xlane.f32.xlu0 %v4032_v31  ;;  %v4387_v29 = vpop.eup %3247 }
 0x242   : > { %v4391_v40 = vpop.eup %3249 }
 0x243   : > { %v4394_v37 = vpop.eup %3251 }
 0x244   : > { %v4401_v43 = vpop.eup %3253 }
 0x245   : > { %1051 = vadd.xlane.f32.xlu0 %v4258_v42 }
 0x249   : > { %1055 = vadd.xlane.f32.xlu0 %v4164_v45 }
 0x24d   : > { %1059 = vadd.xlane.f32.xlu0 %v4117_v2 }
 0x24f   : > { %1047 = vadd.xlane.f32.xlu1 %v4021_v27 }
 0x251   : > { %1063 = vadd.xlane.f32.xlu0 %v4241_v3 }
 0x253   : > { %1053 = vadd.xlane.f32.xlu1 %v4260_v18 }
 0x255   : > { %1067 = vadd.xlane.f32.xlu0 %v4212_v49 }
 0x257   : > { %1057 = vadd.xlane.f32.xlu1 %v4171_v19 }
 0x259   : > { %1071 = vadd.xlane.f32.xlu0 %v4272_v55 }
 0x25b   : > { %1061 = vadd.xlane.f32.xlu1 %v4138_v54 }
 0x25d   : > { %1075 = vadd.xlane.f32.xlu0 %v4287_v26 }
 0x25f   : > { %1065 = vadd.xlane.f32.xlu1 %v4245_v17 }
 0x263   : > { %1069 = vadd.xlane.f32.xlu1 %v4220_v7 }
 0x267   : > { %1073 = vadd.xlane.f32.xlu1 %v4274_v28 }
 0x26b   : > { %1077 = vadd.xlane.f32.xlu1 %v4289_v0 }
 0x273   : > { %1146 = vperm.xlu0 %3149, %v4344_v60  }
 0x277   : > { %1161 = vperm.xlu0 %3149, %v4356_v62  }
 0x27b   : > { %1171 = vperm.xlu0 %3149, %v4368_v12  }
 0x27c   : > { %1151 = vperm.xlu1 %3150, %v4349_v47  }
 0x27e   : > { %v1273_v35 = vpop.permute.xlu1 %1272 }
 0x27f   : > { %1181 = vperm.xlu0 %3149, %v4381_v4   ;;  %v1326_v11 = vmul.f32 %v4117_v2, %v1273_v35 }
 0x280   : > { %1156 = vperm.xlu1 %3150, %v4361_v56  }
 0x281   : > { %v1263_v52 = vpop.permute.xlu0 %1262 }
 0x282   : > { %v1243_v21 = vpop.permute.xlu1 %1242 }
 0x283   : > { %v1320_v53 = vmul.f32 %v4021_v27, %v1243_v21  ;;  %1191 = vperm.xlu0 %3149, %v4391_v40  }
 0x284   : > { %1166 = vperm.xlu1 %3150, %v4373_v32  }
 0x285   : > { %v1248_v30 = vpop.permute.xlu0 %1247 }
 0x286   : > { %v1321_v24 = vmul.f32 %v4032_v31, %v1248_v30  ;;  %v1278_v25 = vpop.permute.xlu1 %1277  ;;  %v1324_v31 = vmul.f32 %v4164_v45, %v1263_v52 }
 0x287   : > { %v1327_v6 = vmul.f32 %v4138_v54, %v1278_v25  ;;  %v4403_v54 = vpop.eup %3255  ;;  %1201 = vperm.xlu0 %3149, %v4401_v43  }
 0x288   : > { %v1336_v27 = vpack.c.bf16 %v1321_v24, %v1320_v53  ;;  %1176 = vperm.xlu1 %3150, %v4387_v29   ;;  %v4407_v45 = vpop.eup %3257 }
 0x289   : > { %v1339_v46 = vpack.c.bf16 %v1327_v6, %v1326_v11  ;;  %v4409_v1 = vpop.eup %3259 }
 0x28a   : > { %2990 = vmatprep.mubr.bf16.mxu0 %v1336_v27  ;;  %v1268_v33 = vpop.permute.xlu1 %1267  ;;  %v4413_v2 = vpop.eup %3261 }
 0x28b   : > { %v1325_v39 = vmul.f32 %v4171_v19, %v1268_v33  ;;  %1211 = vperm.xlu0 %3149, %v4407_v45   ;;  %v4415_v44 = vpop.eup %3263  ;;  %v1015_v33 = vld [vmem:[#allocation3] sm:$0xff] }
 0x28c   : > { %1186 = vperm.xlu1 %3150, %v4394_v37  }
 0x28d   : > { %v1338_v8 = vpack.c.bf16 %v1325_v39, %v1324_v31 }
 0x28e   : > { %v1293_v51 = vpop.permute.xlu1 %1292 }
 0x28f   : > { %2994 = vmatprep.mubr.bf16.mxu1 %v1338_v8  ;;  %1221 = vperm.xlu0 %3149, %v4413_v2   ;;  %v1330_v9 = vmul.f32 %v4212_v49, %v1293_v51  ;;  %v1031_v8 = vmul.f32 %v4344_v60, %v1015_v33  ;;  %v1018_v51 = vld [vmem:[#allocation3 + $0x18] sm:$0xff] }
 0x290   : > { %1196 = vperm.xlu1 %3150, %v4403_v54   ;;  %2995 = vmatmul.mubr.bf16.vlgmr.msra.gmra.mxu1 %v1339_v46 }
 0x291   : > { %v1258_v34 = vpop.permute.xlu0 %1257 }
 0x292   : > { %v1283_v19 = vpop.permute.xlu1 %1282  ;;  %v1323_v15 = vmul.f32 %v4260_v18, %v1258_v34  ;;  %v1021_v34 = vld [vmem:[#allocation3 + $0x30] sm:$0xff] }
 0x293   : > { %v1328_v57 = vmul.f32 %v4241_v3, %v1283_v19 }
 0x294   : > { %1206 = vperm.xlu1 %3150, %v4409_v1  }
 0x296   : > { %v1298_v36 = vpop.permute.xlu1 %1297 }
 0x297   : > { %v1331_v41 = vmul.f32 %v4220_v7, %v1298_v36 }
 0x298   : > { %1216 = vperm.xlu1 %3150, %v4415_v44   ;;  %v1308_v21 = vpop.permute.xlu0 %1307 }
 0x299   : > { %v1341_v52 = vpack.c.bf16 %v1331_v41, %v1330_v9  ;;  %v1333_v7 = vmul.f32 %v4274_v28, %v1308_v21  ;;  %v1017_v28 = vld [vmem:[#allocation3 + $0x10] sm:$0xff] }
 0x29a   : > { %v1288_v38 = vpop.permute.xlu1 %1287  ;;  %v1033_v31 = vmul.f32 %v4361_v56, %v1017_v28 }
 0x29b   : > { %v1329_v35 = vmul.f32 %v4245_v17, %v1288_v38 }
 0x29d   : > { %v1340_v23 = vpack.c.bf16 %v1329_v35, %v1328_v57  ;;  %v1318_v17 = vpop.permute.xlu0 %1317  ;;  %v1037_v57 = vmul.f32 %v4387_v29, %v1021_v34 }
 0x29e   : > { %v1253_v48 = vpop.permute.xlu1 %1252  ;;  %v1335_v13 = vmul.f32 %v4289_v0, %v1318_v17 }
 0x29f   : > { %v1322_v53 = vmul.f32 %v4258_v42, %v1253_v48  ;;  %2998 = vmatprep.mubr.bf16.mxu1 %v1340_v23  ;;  %v1016_v42 = vld [vmem:[#allocation3 + $0x8] sm:$0xff] }
 0x2a0   : > { %2999 = vmatmul.mubr.bf16.gmra.mxu1 %v1341_v52  ;;  %v1032_v25 = vmul.f32 %v4349_v47, %v1016_v42  ;;  %v4871_v48 = vld [vmem:[#allocation26_spill] sm:$0xff] }
 0x2a1   : > { %v1337_v14 = vpack.c.bf16 %v1323_v15, %v1322_v53 }
 0x2a2   : > { %v1303_v59 = vpop.permute.xlu1 %1302 }
 0x2a3   : > { %v1332_v3 = vmul.f32 %v4272_v55, %v1303_v59  ;;  %2991 = vmatmul.mubr.bf16.vlgmr.msra.gmra.mxu0 %v1337_v14 }
 0x2a5   : > { %v1342_v30 = vpack.c.bf16 %v1333_v7, %v1332_v3  ;;  %v4872_v3 = vld [vmem:[#allocation25_spill] sm:$0xff] }
 0x2a6   : > { %v1313_v49 = vpop.permute.xlu1 %1312 }
 0x2a7   : > { %v1334_v63 = vmul.f32 %v4287_v26, %v1313_v49  ;;  %3002 = vmatprep.mubr.bf16.mxu1 %v1342_v30  ;;  %v1019_v26 = vld [vmem:[#allocation3 + $0x20] sm:$0xff]  ;;  %v1024_v30 = vld [vmem:[#allocation3 + $0x48] sm:$0xff] }
 0x2a8   : > { %v1040_v42 = vmul.f32 %v4391_v40, %v1024_v30 }
 0x2a9   : > { %v1343_v18 = vpack.c.bf16 %v1335_v13, %v1334_v63 }
 0x2ab   : > { %3003 = vmatmul.mubr.bf16.gmra.mxu1 %v1343_v18 }
 0x2ca   : > { %v1050_v24 = vpop.xlane.xlu0 %1049 }
 0x2cb   : > { %v1080_v27 = vmul.f32 %v4152_v5, %v1050_v24  ;;  %v1035_v5 = vmul.f32 %v4373_v32, %v1019_v26  ;;  %v4873_v24 = vld [vmem:[#allocation28_spill] sm:$0xff]  ;;  %v4875_v26 = vld [vmem:[#allocation27_spill] sm:$0xff] }
 0x2cd   : > { %v1096_v6 = vadd.f32 %v1080_v27, %v1032_v25  ;;  %v1026_v27 = vld [vmem:[#allocation3 + $0x58] sm:$0xff] }
 0x2ce   : > { %v1052_v55 = vpop.xlane.xlu0 %1051 }
 0x2cf   : > { %1113 = vst.msk [vmem:[#allocation3 + $0x8] sm:$0xff] %vm1111_vm5, %v1096_v6  ;;  %v1081_v0 = vmul.f32 %v4276_v22, %v1052_v55  ;;  %v1034_v22 = vmul.f32 %v4356_v62, %v1018_v51  ;;  %v4874_v6 = vld [vmem:[#allocation30_spill] sm:$0xff] }
 0x2d1   : > { %v1097_v11 = vadd.f32 %v1081_v0, %v1033_v31  ;;  %v1042_v0 = vmul.f32 %v4401_v43, %v1026_v27  ;;  %v1030_v43 = vld [vmem:[#allocation3 + $0x78] sm:$0xff] }
 0x2d2   : > { %v1056_v47 = vpop.xlane.xlu0 %1055 }
 0x2d3   : > { %1114 = vst.msk [vmem:[#allocation3 + $0x10] sm:$0xff] %vm1111_vm5, %v1097_v11  ;;  %v1083_v19 = vmul.f32 %v4128_v50, %v1056_v47  ;;  %v1023_v50 = vld [vmem:[#allocation3 + $0x40] sm:$0xff]  ;;  %v1028_v11 = vld [vmem:[#allocation3 + $0x68] sm:$0xff] }
 0x2d4   : > { %v1039_v21 = vmul.f32 %v4394_v37, %v1023_v50 }
 0x2d5   : > { %v1099_v41 = vadd.f32 %v1083_v19, %v1035_v5  ;;  %v1044_v19 = vmul.f32 %v4407_v45, %v1028_v11 }
 0x2d6   : > { %v1060_v38 = vpop.xlane.xlu0 %1059 }
 0x2d7   : > { %1116 = vst.msk [vmem:[#allocation3 + $0x20] sm:$0xff] %vm1111_vm5, %v1099_v41  ;;  %v1085_v32 = vmul.f32 %v4102_v10, %v1060_v38  ;;  %v1025_v10 = vld [vmem:[#allocation3 + $0x50] sm:$0xff] }
 0x2d8   : > { %v1048_v39 = vpop.xlane.xlu1 %1047  ;;  %v1041_v49 = vmul.f32 %v4403_v54, %v1025_v10 }
 0x2d9   : > { %v1079_v46 = vmul.f32 %v4111_v16, %v1048_v39  ;;  %v1020_v16 = vld [vmem:[#allocation3 + $0x28] sm:$0xff]  ;;  %v1101_v23 = vadd.f32 %v1085_v32, %v1037_v57 }
 0x2da   : > { %v1036_v52 = vmul.f32 %v4368_v12, %v1020_v16  ;;  %v1064_v15 = vpop.xlane.xlu0 %1063 }
 0x2db   : > { %v1095_v36 = vadd.f32 %v1079_v46, %v1031_v8  ;;  %1118 = vst.msk [vmem:[#allocation3 + $0x30] sm:$0xff] %vm1111_vm5, %v1101_v23  ;;  %v1087_v29 = vmul.f32 %v4249_v20, %v1064_v15  ;;  %v1027_v20 = vld [vmem:[#allocation3 + $0x60] sm:$0xff]  ;;  %v4876_v46 = vld [vmem:[#allocation32_spill] sm:$0xff] }
 0x2dc   : > { %v1054_v56 = vpop.xlane.xlu1 %1053  ;;  %v1043_v28 = vmul.f32 %v4409_v1, %v1027_v20  ;;  %v1136_v20 = vld [vmem:[#allocation4 + $0x40] sm:$0xff] }
 0x2dd   : > { %1112 = vst.msk [vmem:[#allocation3] sm:$0xff] %vm1111_vm5, %v1095_v36  ;;  %v1082_v60 = vmul.f32 %v4265_v58, %v1054_v56  ;;  %v1022_v58 = vld [vmem:[#allocation3 + $0x38] sm:$0xff]  ;;  %v1103_v59 = vadd.f32 %v1087_v29, %v1039_v21  ;;  %v4877_v36 = vld [vmem:[#allocation29_spill] sm:$0xff]  ;;  %v1133_v29 = vld [vmem:[#allocation4 + $0x28] sm:$0xff] }
 0x2de   : > { %v1038_v7 = vmul.f32 %v4381_v4, %v1022_v58  ;;  %v1068_v17 = vpop.xlane.xlu0 %1067 }
 0x2df   : > { %v1098_v35 = vadd.f32 %v1082_v60, %v1034_v22  ;;  %1120 = vst.msk [vmem:[#allocation3 + $0x40] sm:$0xff] %vm1111_vm5, %v1103_v59  ;;  %v1089_v37 = vmul.f32 %v4234_v61, %v1068_v17  ;;  %v1029_v61 = vld [vmem:[#allocation3 + $0x70] sm:$0xff] }
 0x2e0   : > { %v1058_v9 = vpop.xlane.xlu1 %1057  ;;  %v1045_v8 = vmul.f32 %v4415_v44, %v1029_v61  ;;  %v1046_v44 = vmul.f32 %v4413_v2, %v1030_v43  ;;  %v4878_v22 = vld [vmem:[#allocation31_spill] sm:$0xff] }
 0x2e1   : > { %1115 = vst.msk [vmem:[#allocation3 + $0x18] sm:$0xff] %vm1111_vm5, %v1098_v35  ;;  %v1084_v62 = vmul.f32 %v4871_v48, %v1058_v9  ;;  %v1105_v18 = vadd.f32 %v1089_v37, %v1041_v49  ;;  %v1134_v9 = vld [vmem:[#allocation4 + $0x30] sm:$0xff] }
 0x2e2   : > { %v1072_v25 = vpop.xlane.xlu0 %1071 }
 0x2e3   : > { %v1100_v53 = vadd.f32 %v1084_v62, %v1036_v52  ;;  %1122 = vst.msk [vmem:[#allocation3 + $0x50] sm:$0xff] %vm1111_vm5, %v1105_v18  ;;  %v1091_v54 = vmul.f32 %v4874_v6, %v1072_v25  ;;  %v1132_v52 = vld [vmem:[#allocation4 + $0x20] sm:$0xff]  ;;  %v1135_v62 = vld [vmem:[#allocation4 + $0x38] sm:$0xff] }
 0x2e4   : > { %v1062_v14 = vpop.xlane.xlu1 %1061  ;;  %v1128_v25 = vld [vmem:[#allocation4] sm:$0xff] }
 0x2e5   : > { %1117 = vst.msk [vmem:[#allocation3 + $0x28] sm:$0xff] %vm1111_vm5, %v1100_v53  ;;  %v1086_v12 = vmul.f32 %v4872_v3, %v1062_v14  ;;  %v1107_v31 = vadd.f32 %v1091_v54, %v1043_v28  ;;  %v1137_v54 = vld [vmem:[#allocation4 + $0x48] sm:$0xff] }
 0x2e6   : > { %v1076_v39 = vpop.xlane.xlu0 %1075 }
 0x2e7   : > { %v1102_v13 = vadd.f32 %v1086_v12, %v1038_v7  ;;  %1124 = vst.msk [vmem:[#allocation3 + $0x60] sm:$0xff] %vm1111_vm5, %v1107_v31  ;;  %v1093_v1 = vmul.f32 %v4876_v46, %v1076_v39 }
 0x2e8   : > { %v1066_v63 = vpop.xlane.xlu1 %1065 }
 0x2e9   : > { %1119 = vst.msk [vmem:[#allocation3 + $0x38] sm:$0xff] %vm1111_vm5, %v1102_v13  ;;  %v1088_v4 = vmul.f32 %v4873_v24, %v1066_v63  ;;  %v1109_v5 = vadd.f32 %v1093_v1, %v1045_v8  ;;  %v1138_v13 = vld [vmem:[#allocation4 + $0x50] sm:$0xff]  ;;  %v1139_v24 = vld [vmem:[#allocation4 + $0x58] sm:$0xff]  ;;  %v1129_v8 = vld [vmem:[#allocation4 + $0x8] sm:$0xff] }
 0x2ea   : > { %v1130_v63 = vld [vmem:[#allocation4 + $0x10] sm:$0xff] }
 0x2eb   : > { %v1104_v55 = vadd.f32 %v1088_v4, %v1040_v42  ;;  %1126 = vst.msk [vmem:[#allocation3 + $0x70] sm:$0xff] %vm1111_vm5, %v1109_v5 }
 0x2ec   : > { %v1070_v33 = vpop.xlane.xlu1 %1069 }
 0x2ed   : > { %1121 = vst.msk [vmem:[#allocation3 + $0x48] sm:$0xff] %vm1111_vm5, %v1104_v55  ;;  %v1090_v40 = vmul.f32 %v4875_v26, %v1070_v33  ;;  %v1131_v33 = vld [vmem:[#allocation4 + $0x18] sm:$0xff] }
 0x2ee   : > { %v1147_v57 = vpop.permute.xlu0 %1146 }
 0x2ef   : > { %v1106_v47 = vadd.f32 %v1090_v40, %v1042_v0  ;;  %v1224_v40 = vmul.f32 %v1147_v57, %v1128_v25 }
 0x2f0   : > { %v1074_v51 = vpop.xlane.xlu1 %1073 }
 0x2f1   : > { %1123 = vst.msk [vmem:[#allocation3 + $0x58] sm:$0xff] %vm1111_vm5, %v1106_v47  ;;  %v1092_v34 = vmul.f32 %v4877_v36, %v1074_v51 }
 0x2f2   : > { %v1162_v32 = vpop.permute.xlu0 %1161 }
 0x2f3   : > { %v1108_v56 = vadd.f32 %v1092_v34, %v1044_v19  ;;  %v1227_v5 = vmul.f32 %v1162_v32, %v1131_v33  ;;  %v1142_v34 = vld [vmem:[#allocation4 + $0x70] sm:$0xff]  ;;  %v1143_v32 = vld [vmem:[#allocation4 + $0x78] sm:$0xff] }
 0x2f4   : > { %v1078_v41 = vpop.xlane.xlu1 %1077 }
 0x2f5   : > { %1125 = vst.msk [vmem:[#allocation3 + $0x68] sm:$0xff] %vm1111_vm5, %v1108_v56  ;;  %v1094_v60 = vmul.f32 %v4878_v22, %v1078_v41 }
 0x2f6   : > { %v1172_v50 = vpop.permute.xlu0 %1171 }
 0x2f7   : > { %v1110_v38 = vadd.f32 %v1094_v60, %v1046_v44  ;;  %v1229_v7 = vmul.f32 %v1172_v50, %v1133_v29  ;;  %v1140_v60 = vld [vmem:[#allocation4 + $0x60] sm:$0xff] }
 0x2f8   : > { %v4477_v16 = vpop.permute.xlu1 %1151 }
 0x2f9   : > { %1127 = vst.msk [vmem:[#allocation3 + $0x78] sm:$0xff] %vm1111_vm5, %v1110_v38  ;;  %v1225_v44 = vmul.f32 %v4477_v16, %v1129_v8 }
 0x2fa   : > { %v1182_v15 = vpop.permute.xlu0 %1181 }
 0x2fb   : > { %v1231_v10 = vmul.f32 %v1182_v15, %v1135_v62 }
 0x2fc   : > { %v1157_v45 = vpop.permute.xlu1 %1156 }
 0x2fd   : > { %v1226_v55 = vmul.f32 %v1157_v45, %v1130_v63 }
 0x2fe   : > { %v1192_v49 = vpop.permute.xlu0 %1191 }
 0x2ff   : > { %v1233_v46 = vmul.f32 %v1192_v49, %v1137_v54 }
 0x300   : > { %v1167_v35 = vpop.permute.xlu1 %1166 }
 0x301   : > { %v1228_v2 = vmul.f32 %v1167_v35, %v1132_v52  ;;  %v1141_v52 = vld [vmem:[#allocation4 + $0x68] sm:$0xff] }
 0x302   : > { %v1202_v18 = vpop.permute.xlu0 %1201 }
 0x303   : > { %v1235_v31 = vmul.f32 %v1202_v18, %v1139_v24 }
 0x304   : > { %v1177_v23 = vpop.permute.xlu1 %1176 }
 0x305   : > { %v1230_v48 = vmul.f32 %v1177_v23, %v1134_v9 }
 0x306   : > { %v1212_v1 = vpop.permute.xlu0 %1211 }
 0x308   : > { %v1187_v3 = vpop.permute.xlu1 %1186 }
 0x309   : > { %v1232_v27 = vmul.f32 %v1187_v3, %v1136_v20 }
 0x30a   : > { %v1222_v35 = vpop.permute.xlu0 %1221 }
 0x30c   : > { %v1197_v37 = vpop.permute.xlu1 %1196 }
 0x30d   : > { %v1234_v42 = vmul.f32 %v1197_v37, %v1138_v13 }
 0x310   : > { %v1207_v28 = vpop.permute.xlu1 %1206 }
 0x311   : > { %v1236_v9 = vmul.f32 %v1207_v28, %v1140_v60 }
 0x314   : > { %v1217_v43 = vpop.permute.xlu1 %1216 }
 0x315   : > { %v1238_v57 = vmul.f32 %v1217_v43, %v1142_v34 }
 0x350   : > { %v2996_v58 = vpop.f32.mrf.mxu1 }
 0x351   : > { %v1495_v21 = vadd.f32 %v2996_v58, %v1230_v48  ;;  %v1239_v48 = vmul.f32 %v1222_v35, %v1143_v32  ;;  %v1237_v58 = vmul.f32 %v1212_v1, %v1141_v52 }
 0x352   : > { %v1442_v53 = vpop.f32.mrf.mxu1 }
 0x353   : > { %1511 = vst.msk [vmem:[#allocation4 + $0x30] sm:$0xff] %vm615_vm3, %v1495_v21  ;;  %v1493_v14 = vadd.f32 %v1442_v53, %v1228_v2 }
 0x354   : > { %v2997_v59 = vpop.f32.mrf.mxu1 }
 0x355   : > { %1509 = vst.msk [vmem:[#allocation4 + $0x20] sm:$0xff] %vm615_vm3, %v1493_v14  ;;  %v1496_v12 = vadd.f32 %v2997_v59, %v1231_v10 }
 0x356   : > { %v1445_v17 = vpop.f32.mrf.mxu1 }
 0x357   : > { %1512 = vst.msk [vmem:[#allocation4 + $0x38] sm:$0xff] %vm615_vm3, %v1496_v12  ;;  %v1494_v30 = vadd.f32 %v1445_v17, %v1229_v7 }
 0x359   : > { %1510 = vst.msk [vmem:[#allocation4 + $0x28] sm:$0xff] %vm615_vm3, %v1494_v30 }
 0x360   : > { %v3000_v4 = vpop.f32.mrf.mxu1 }
 0x361   : > { %v1499_v6 = vadd.f32 %v3000_v4, %v1234_v42 }
 0x362   : > { %v1458_v61 = vpop.f32.mrf.mxu1 }
 0x363   : > { %1515 = vst.msk [vmem:[#allocation4 + $0x50] sm:$0xff] %vm615_vm3, %v1499_v6  ;;  %v1497_v0 = vadd.f32 %v1458_v61, %v1232_v27  ;;  %v2992_v26 = vpop.f32.mrf.mxu0 }
 0x364   : > { %v1491_v39 = vadd.f32 %v2992_v26, %v1226_v55  ;;  %v3001_v11 = vpop.f32.mrf.mxu1 }
 0x365   : > { %1513 = vst.msk [vmem:[#allocation4 + $0x40] sm:$0xff] %vm615_vm3, %v1497_v0  ;;  %v1500_v47 = vadd.f32 %v3001_v11, %v1235_v31  ;;  %v1426_v51 = vpop.f32.mrf.mxu0 }
 0x366   : > { %1507 = vst.msk [vmem:[#allocation4 + $0x10] sm:$0xff] %vm615_vm3, %v1491_v39  ;;  %v1489_v19 = vadd.f32 %v1426_v51, %v1224_v40  ;;  %v1461_v36 = vpop.f32.mrf.mxu1 }
 0x367   : > { %1516 = vst.msk [vmem:[#allocation4 + $0x58] sm:$0xff] %vm615_vm3, %v1500_v47  ;;  %v1498_v56 = vadd.f32 %v1461_v36, %v1233_v46  ;;  %v2993_v41 = vpop.f32.mrf.mxu0 }
 0x368   : > { %1505 = vst.msk [vmem:[#allocation4] sm:$0xff] %vm615_vm3, %v1489_v19  ;;  %v1492_v22 = vadd.f32 %v2993_v41, %v1227_v5 }
 0x369   : > { %1514 = vst.msk [vmem:[#allocation4 + $0x48] sm:$0xff] %vm615_vm3, %v1498_v56  ;;  %v1429_v38 = vpop.f32.mrf.mxu0 }
 0x36a   : > { %1508 = vst.msk [vmem:[#allocation4 + $0x18] sm:$0xff] %vm615_vm3, %v1492_v22  ;;  %v1490_v45 = vadd.f32 %v1429_v38, %v1225_v44 }
 0x36b   : > { %v3004_v50 = vpop.f32.mrf.mxu1 }
 0x36c   : > { %1506 = vst.msk [vmem:[#allocation4 + $0x8] sm:$0xff] %vm615_vm3, %v1490_v45  ;;  %v1503_v23 = vadd.f32 %v3004_v50, %v1238_v57 }
 0x36d   : > { %v1474_v16 = vpop.f32.mrf.mxu1 }
 0x36e   : > { %1519 = vst.msk [vmem:[#allocation4 + $0x70] sm:$0xff] %vm615_vm3, %v1503_v23  ;;  %v1501_v62 = vadd.f32 %v1474_v16, %v1236_v9 }
 0x36f   : > { %v3005_v15 = vpop.f32.mrf.mxu1 }
 0x370   : > { %1517 = vst.msk [vmem:[#allocation4 + $0x60] sm:$0xff] %vm615_vm3, %v1501_v62  ;;  %v1504_v2 = vadd.f32 %v3005_v15, %v1239_v48 }
 0x371   : > { %v1477_v21 = vpop.f32.mrf.mxu1 }
 0x372   : > { %1520 = vst.msk [vmem:[#allocation4 + $0x78] sm:$0xff] %vm615_vm3, %v1504_v2  ;;  %v1502_v29 = vadd.f32 %v1477_v21, %v1237_v58 }
 0x374   : > { %1518 = vst.msk [vmem:[#allocation4 + $0x68] sm:$0xff] %vm615_vm3, %v1502_v29 }
 0x375 PF: > { %p2711_p0 = scmp.ne.s32.totalorder %s3471_s20, 1 }
 0x377   : > { %1640 = sbr.rel (%p2711_p0) target bundleno = 1129 (0x469), region = 89 }
 0x37c   : > { %v1659_v53 = vld [vmem:[#allocation3 + $0x10] sm:$0xff]  ;;  %v1657_v10 = vld [vmem:[#allocation3] sm:$0xff]  ;;  %v1660_v14 = vld [vmem:[#allocation3 + $0x18] sm:$0xff]  ;;  %v3510_v59 = vmov 0   ;;  %vm1801_vm3 = vcmask 261120  }
 0x37d   : > { %3266 = vset.pattern.permute.xlu1 %v3510_v59  ;;  %3265 = vset.pattern.permute.xlu0 %v3510_v59  ;;  %3267 = vrcp.f32 %v1659_v53  ;;  %v1658_v7 = vld [vmem:[#allocation3 + $0x8] sm:$0xff]  ;;  %v1661_v12 = vld [vmem:[#allocation3 + $0x20] sm:$0xff]  ;;  %v1664_v17 = vld [vmem:[#allocation3 + $0x38] sm:$0xff] }
 0x37e   : > { %3269 = vrcp.f32 %v1657_v10  ;;  %v1662_v3 = vld [vmem:[#allocation3 + $0x28] sm:$0xff]  ;;  %v1663_v30 = vld [vmem:[#allocation3 + $0x30] sm:$0xff]  ;;  %v1665_v37 = vld [vmem:[#allocation3 + $0x40] sm:$0xff] }
 0x37f   : > { %3271 = vrcp.f32 %v1660_v14  ;;  %v1666_v49 = vld [vmem:[#allocation3 + $0x48] sm:$0xff]  ;;  %v1668_v18 = vld [vmem:[#allocation3 + $0x58] sm:$0xff]  ;;  %v1667_v25 = vld [vmem:[#allocation3 + $0x50] sm:$0xff] }
 0x380   : > { %3273 = vrcp.f32 %v1658_v7  ;;  %v4505_v42 = vld [vmem:[#allocation2 + $0x8] sm:$0xff]  ;;  %v4509_v27 = vld [vmem:[#allocation2] sm:$0xff]  ;;  %v4517_v33 = vld [vmem:[#allocation2 + $0x18] sm:$0xff] }
 0x381   : > { %3275 = vrcp.f32 %v1662_v3  ;;  %v1819_v24 = vld [vmem:[#allocation5 + $0x8] sm:$0xff]  ;;  %v1818_v28 = vld [vmem:[#allocation5] sm:$0xff]  ;;  %v1821_v31 = vld [vmem:[#allocation5 + $0x18] sm:$0xff] }
 0x382   : > { %3277 = vrcp.f32 %v1661_v12  ;;  %v1835_v6 = vsub.f32 %v1819_v24, %v4505_v42  ;;  %v1670_v55 = vld [vmem:[#allocation3 + $0x68] sm:$0xff]  ;;  %v1834_v61 = vsub.f32 %v1818_v28, %v4509_v27  ;;  %v1669_v26 = vld [vmem:[#allocation3 + $0x60] sm:$0xff]  ;;  %v4521_v40 = vld [vmem:[#allocation2 + $0x10] sm:$0xff]  ;;  %v1837_v1 = vsub.f32 %v1821_v31, %v4517_v33 }
 0x383   : > { %3279 = vrcp.f32 %v1664_v17  ;;  %v1820_v39 = vld [vmem:[#allocation5 + $0x10] sm:$0xff]  ;;  %v1672_v11 = vld [vmem:[#allocation3 + $0x78] sm:$0xff]  ;;  %v4529_v19 = vld [vmem:[#allocation2 + $0x28] sm:$0xff] }
 0x384   : > { %3281 = vrcp.f32 %v1663_v30  ;;  %v1671_v8 = vld [vmem:[#allocation3 + $0x70] sm:$0xff]  ;;  %v1852_v46 = vmul.f32 1.442695, %v1835_v6  ;;  %v1850_v51 = vmul.f32 1.442695, %v1834_v61  ;;  %v1836_v5 = vsub.f32 %v1820_v39, %v4521_v40  ;;  %v1823_v36 = vld [vmem:[#allocation5 + $0x28] sm:$0xff] }
 0x385   : > { %3283 = vrcp.f32 %v1666_v49  ;;  %v4533_v43 = vld [vmem:[#allocation2 + $0x20] sm:$0xff]  ;;  %v1856_v41 = vmul.f32 1.442695, %v1837_v1  ;;  %v1839_v44 = vsub.f32 %v1823_v36, %v4529_v19  ;;  %v4541_v57 = vld [vmem:[#allocation2 + $0x38] sm:$0xff]  ;;  %v4545_v35 = vld [vmem:[#allocation2 + $0x30] sm:$0xff] }
 0x386   : > { %3285 = vrcp.f32 %v1665_v37  ;;  %v1822_v56 = vld [vmem:[#allocation5 + $0x20] sm:$0xff]  ;;  %v1854_v60 = vmul.f32 1.442695, %v1836_v5  ;;  %v1825_v45 = vld [vmem:[#allocation5 + $0x38] sm:$0xff]  ;;  %v1824_v50 = vld [vmem:[#allocation5 + $0x30] sm:$0xff] }
 0x387   : > { %3287 = vrcp.f32 %v1668_v18  ;;  %v1838_v38 = vsub.f32 %v1822_v56, %v4533_v43  ;;  %v1860_v9 = vmul.f32 1.442695, %v1839_v44  ;;  %v1841_v23 = vsub.f32 %v1825_v45, %v4541_v57  ;;  %v4553_v62 = vld [vmem:[#allocation2 + $0x48] sm:$0xff]  ;;  %v4557_v2 = vld [vmem:[#allocation2 + $0x40] sm:$0xff]  ;;  %v4565_v7 = vld [vmem:[#allocation2 + $0x58] sm:$0xff] }
 0x388   : > { %3289 = vrcp.f32 %v1667_v25  ;;  %v1840_v48 = vsub.f32 %v1824_v50, %v4545_v35  ;;  %v1827_v15 = vld [vmem:[#allocation5 + $0x48] sm:$0xff]  ;;  %v1826_v21 = vld [vmem:[#allocation5 + $0x40] sm:$0xff]  ;;  %v1829_v3 = vld [vmem:[#allocation5 + $0x58] sm:$0xff] }
 0x389   : > { %3291 = vrcp.f32 %v1670_v55  ;;  %v1858_v16 = vmul.f32 1.442695, %v1838_v38  ;;  %v1864_v29 = vmul.f32 1.442695, %v1841_v23  ;;  %v1843_v53 = vsub.f32 %v1827_v15, %v4553_v62  ;;  %v4569_v17 = vld [vmem:[#allocation2 + $0x50] sm:$0xff]  ;;  %v4579_v55 = vld [vmem:[#allocation2 + $0x68] sm:$0xff] }
 0x38a   : > { %v4497_v13 = vpop.eup %3267  ;;  %3293 = vrcp.f32 %v1669_v26  ;;  %v1862_v14 = vmul.f32 1.442695, %v1840_v48  ;;  %v1842_v59 = vsub.f32 %v1826_v21, %v4557_v2  ;;  %v1828_v30 = vld [vmem:[#allocation5 + $0x50] sm:$0xff]  ;;  %v1845_v24 = vsub.f32 %v1829_v3, %v4565_v7  ;;  %v1831_v61 = vld [vmem:[#allocation5 + $0x68] sm:$0xff]  ;;  %v4581_v26 = vld [vmem:[#allocation2 + $0x60] sm:$0xff] }
 0x38b   : > { %v4499_v20 = vpop.eup %3269  ;;  %1717 = vperm.xlu1 %3266, %v4497_v13   ;;  %3295 = vrcp.f32 %v1672_v11  ;;  %v1868_v18 = vmul.f32 1.442695, %v1843_v53  ;;  %v1844_v6 = vsub.f32 %v1828_v30, %v4569_v17  ;;  %v1830_v39 = vld [vmem:[#allocation5 + $0x60] sm:$0xff]  ;;  %v4589_v56 = vld [vmem:[#allocation2 + $0x78] sm:$0xff]  ;;  %v1832_v38 = vld [vmem:[#allocation5 + $0x70] sm:$0xff] }
 0x38c   : > { %v4502_v63 = vpop.eup %3271  ;;  %1707 = vperm.xlu0 %3265, %v4499_v20   ;;  %3297 = vrcp.f32 %v1671_v8  ;;  %v1866_v28 = vmul.f32 1.442695, %v1842_v59  ;;  %v1872_v8 = vmul.f32 1.442695, %v1845_v24  ;;  %v1846_v36 = vsub.f32 %v1830_v39, %v4581_v26  ;;  %v2108_v21 = vld [vmem:[#allocation5 + $0x88] sm:$0xff]  ;;  %v2107_v53 = vld [vmem:[#allocation5 + $0x80] sm:$0xff] }
 0x38d   : > { %v4507_v4 = vpop.eup %3273  ;;  %3299 = vpow2.f32 %v1852_v46  ;;  %v1847_v46 = vsub.f32 %v1831_v61, %v4579_v55  ;;  %v1870_v5 = vmul.f32 1.442695, %v1844_v6  ;;  %v2124_v3 = vsub.f32 %v2108_v21, %v4505_v42  ;;  %v2109_v61 = vld [vmem:[#allocation5 + $0x90] sm:$0xff] }
 0x38e   : > { %v4513_v54 = vpop.eup %3275  ;;  %3301 = vpow2.f32 %v1850_v51  ;;  %v1874_v48 = vmul.f32 1.442695, %v1846_v36 }
 0x38f   : > { %1722 = vperm.xlu1 %3266, %v4502_v63   ;;  %v4519_v0 = vpop.eup %3277  ;;  %3303 = vpow2.f32 %v1856_v41  ;;  %v1833_v41 = vld [vmem:[#allocation5 + $0x78] sm:$0xff]  ;;  %v1876_v50 = vmul.f32 1.442695, %v1847_v46  ;;  %v2141_v39 = vmul.f32 1.442695, %v2124_v3 }
 0x390   : > { %1712 = vperm.xlu0 %3265, %v4507_v4   ;;  %v4525_v47 = vpop.eup %3279  ;;  %3305 = vpow2.f32 %v1854_v60  ;;  %v4591_v60 = vld [vmem:[#allocation2 + $0x70] sm:$0xff] }
 0x391   : > { %v4531_v34 = vpop.eup %3281  ;;  %3307 = vpow2.f32 %v1860_v9  ;;  %v1849_v9 = vsub.f32 %v1833_v41, %v4589_v56  ;;  %v1848_v15 = vsub.f32 %v1832_v38, %v4591_v60 }
 0x392   : > { %v4537_v22 = vpop.eup %3283  ;;  %3309 = vpow2.f32 %v1858_v16 }
 0x393   : > { %1732 = vperm.xlu1 %3266, %v4513_v54   ;;  %v4543_v32 = vpop.eup %3285  ;;  %3311 = vpow2.f32 %v1864_v29  ;;  %v1880_v59 = vmul.f32 1.442695, %v1849_v9  ;;  %v1878_v24 = vmul.f32 1.442695, %v1848_v15  ;;  %v2114_v9 = vld [vmem:[#allocation5 + $0xb8] sm:$0xff] }
 0x394   : > { %1727 = vperm.xlu0 %3265, %v4519_v0   ;;  %v4549_v52 = vpop.eup %3287  ;;  %3313 = vpow2.f32 %v1862_v14  ;;  %v2130_v15 = vsub.f32 %v2114_v9, %v4541_v57 }
 0x395   : > { %v4555_v58 = vpop.eup %3289  ;;  %3315 = vpow2.f32 %v1868_v18 }
 0x396   : > { %v4561_v10 = vpop.eup %3291  ;;  %3317 = vpow2.f32 %v1866_v28  ;;  %v2110_v28 = vld [vmem:[#allocation5 + $0x98] sm:$0xff] }
 0x397   : > { %1742 = vperm.xlu1 %3266, %v4525_v47   ;;  %v4567_v12 = vpop.eup %3293  ;;  %3319 = vpow2.f32 %v1872_v8 }
 0x398   : > { %1737 = vperm.xlu0 %3265, %v4531_v34   ;;  %v4571_v49 = vpop.eup %3295  ;;  %3321 = vpow2.f32 %v1870_v5  ;;  %v2111_v5 = vld [vmem:[#allocation5 + $0xa0] sm:$0xff] }
 0x399   : > { %v4573_v37 = vpop.eup %3297  ;;  %3323 = vpow2.f32 %v1876_v50  ;;  %v2127_v50 = vsub.f32 %v2111_v5, %v4533_v43 }
 0x39a   : > { %v3300_v25 = vpop.eup %3299  ;;  %3325 = vpow2.f32 %v1874_v48 }
 0x39b   : > { %1752 = vperm.xlu1 %3266, %v4537_v22   ;;  %v3302_v31 = vpop.eup %3301  ;;  %v1883_v11 = vmul.f32 %v3300_v25, %v4507_v4  ;;  %v2123_v25 = vsub.f32 %v2107_v53, %v4509_v27  ;;  %3327 = vpow2.f32 %v1880_v59  ;;  %v2115_v59 = vld [vmem:[#allocation5 + $0xc0] sm:$0xff] }
 0x39c   : > { %1747 = vperm.xlu0 %3265, %v4543_v32   ;;  %v3304_v1 = vpop.eup %3303  ;;  %v1882_v51 = vmul.f32 %v3302_v31, %v4499_v20  ;;  %3329 = vpow2.f32 %v1878_v24 }
 0x39d   : > { %v3306_v44 = vpop.eup %3305  ;;  %v1885_v45 = vmul.f32 %v3304_v1, %v4502_v63  ;;  %v2139_v46 = vmul.f32 1.442695, %v2123_v25  ;;  %v2125_v1 = vsub.f32 %v2109_v61, %v4521_v40  ;;  %3331 = vpow2.f32 %v2141_v39  ;;  %v2117_v61 = vld [vmem:[#allocation5 + $0xd0] sm:$0xff] }
 0x39e   : > { %v3308_v23 = vpop.eup %3307  ;;  %v1884_v16 = vmul.f32 %v3306_v44, %v4497_v13 }
 0x39f   : > { %1762 = vperm.xlu1 %3266, %v4549_v52   ;;  %v3310_v29 = vpop.eup %3309  ;;  %v1887_v14 = vmul.f32 %v3308_v23, %v4513_v54  ;;  %3333 = vpow2.f32 %v2139_v46  ;;  %v2113_v23 = vld [vmem:[#allocation5 + $0xb0] sm:$0xff]  ;;  %v2133_v46 = vsub.f32 %v2117_v61, %v4569_v17 }
 0x3a0   : > { %1757 = vperm.xlu0 %3265, %v4555_v58   ;;  %v3312_v30 = vpop.eup %3311  ;;  %v1886_v18 = vmul.f32 %v3310_v29, %v4519_v0  ;;  %v2147_v29 = vmul.f32 1.442695, %v2127_v50  ;;  %v2129_v53 = vsub.f32 %v2113_v23, %v4545_v35 }
 0x3a1   : > { %v3314_v6 = vpop.eup %3313  ;;  %v1889_v31 = vmul.f32 %v3312_v30, %v4525_v47  ;;  %v2153_v30 = vmul.f32 1.442695, %v2130_v15 }
 0x3a2   : > { %v3316_v8 = vpop.eup %3315  ;;  %v1888_v42 = vmul.f32 %v3314_v6, %v4531_v34  ;;  %v2151_v25 = vmul.f32 1.442695, %v2129_v53  ;;  %v2118_v6 = vld [vmem:[#allocation5 + $0xd8] sm:$0xff] }
 0x3a3   : > { %1772 = vperm.xlu1 %3266, %v4561_v10   ;;  %v3318_v27 = vpop.eup %3317  ;;  %v1891_v36 = vmul.f32 %v3316_v8, %v4537_v22 }
 0x3a4   : > { %1767 = vperm.xlu0 %3265, %v4567_v12   ;;  %v3320_v38 = vpop.eup %3319 }
 0x3a5   : > { %v3322_v40 = vpop.eup %3321 }
 0x3a6   : > { %v3324_v21 = vpop.eup %3323 }
 0x3a7   : > { %1782 = vperm.xlu1 %3266, %v4571_v49   ;;  %v3326_v43 = vpop.eup %3325  ;;  %v1895_v3 = vmul.f32 %v3324_v21, %v4561_v10 }
 0x3a8   : > { %1777 = vperm.xlu0 %3265, %v4573_v37   ;;  %v3328_v24 = vpop.eup %3327  ;;  %v1894_v57 = vmul.f32 %v3326_v43, %v4567_v12 }
 0x3a9   : > { %v3330_v35 = vpop.eup %3329 }
 0x3aa   : > { %v3332_v8 = vpop.eup %3331 }
 0x3ab   : > { %1937 = vperm.xlu1 %3266, %v1883_v11   ;;  %v2126_v11 = vsub.f32 %v2110_v28, %v4517_v33  ;;  %v1890_v33 = vmul.f32 %v3318_v27, %v4543_v32  ;;  %v2131_v28 = vsub.f32 %v2115_v59, %v4557_v2  ;;  %v2172_v27 = vmul.f32 %v3332_v8, %v4507_v4 }
 0x3ac   : > { %1932 = vperm.xlu0 %3265, %v1882_v51   ;;  %v2112_v51 = vld [vmem:[#allocation5 + $0xa8] sm:$0xff]  ;;  %v3334_v2 = vpop.eup %3333 }
 0x3ad   : > { %v2145_v41 = vmul.f32 1.442695, %v2126_v11  ;;  %v2128_v44 = vsub.f32 %v2112_v51, %v4529_v19  ;;  %v1892_v19 = vmul.f32 %v3322_v40, %v4555_v58  ;;  %v2134_v11 = vsub.f32 %v2118_v6, %v4565_v7  ;;  %v2119_v51 = vld [vmem:[#allocation5 + $0xe0] sm:$0xff]  ;;  %v1690_v6 = vld [vmem:[#allocation4 + $0x8] sm:$0xff] }
 0x3ae   : > { %v2171_v7 = vmul.f32 %v3334_v2, %v4499_v20 }
 0x3af   : > { %1947 = vperm.xlu1 %3266, %v1885_v45   ;;  %v2143_v45 = vmul.f32 1.442695, %v2125_v1  ;;  %3335 = vpow2.f32 %v2145_v41  ;;  %v2149_v48 = vmul.f32 1.442695, %v2128_v44  ;;  %v2120_v1 = vld [vmem:[#allocation5 + $0xe8] sm:$0xff] }
 0x3b0   : > { %1942 = vperm.xlu0 %3265, %v1884_v16   ;;  %v1893_v16 = vmul.f32 %v3320_v38, %v4549_v52  ;;  %v2161_v5 = vmul.f32 1.442695, %v2134_v11  ;;  %v2159_v44 = vmul.f32 1.442695, %v2133_v46  ;;  %v2135_v38 = vsub.f32 %v2119_v51, %v4581_v26  ;;  %v1696_v46 = vld [vmem:[#allocation4 + $0x38] sm:$0xff] }
 0x3b1   : > { %3337 = vpow2.f32 %v2143_v45  ;;  %v2121_v45 = vld [vmem:[#allocation5 + $0xf0] sm:$0xff] }
 0x3b2   : > { %3339 = vpow2.f32 %v2149_v48  ;;  %v2163_v20 = vmul.f32 1.442695, %v2135_v38  ;;  %v2137_v23 = vsub.f32 %v2121_v45, %v4591_v60  ;;  %v1699_v45 = vld [vmem:[#allocation4 + $0x50] sm:$0xff] }
 0x3b3   : > { %1957 = vperm.xlu1 %3266, %v1887_v14   ;;  %v2116_v14 = vld [vmem:[#allocation5 + $0xc8] sm:$0xff]  ;;  %3341 = vpow2.f32 %v2147_v29 }
 0x3b4   : > { %1952 = vperm.xlu0 %3265, %v1886_v18   ;;  %v2132_v18 = vsub.f32 %v2116_v14, %v4553_v62  ;;  %3343 = vpow2.f32 %v2153_v30  ;;  %v1896_v62 = vmul.f32 %v3330_v35, %v4573_v37 }
 0x3b5   : > { %3345 = vpow2.f32 %v2151_v25 }
 0x3b6   : > { %v2157_v39 = vmul.f32 1.442695, %v2132_v18 }
 0x3b7   : > { %1967 = vperm.xlu1 %3266, %v1889_v31   ;;  %v1897_v31 = vmul.f32 %v3328_v24, %v4571_v49  ;;  %v1689_v24 = vld [vmem:[#allocation4] sm:$0xff] }
 0x3b8   : > { %1962 = vperm.xlu0 %3265, %v1888_v42   ;;  %v2155_v42 = vmul.f32 1.442695, %v2131_v28  ;;  %3347 = vpow2.f32 %v2157_v39  ;;  %v1692_v28 = vld [vmem:[#allocation4 + $0x18] sm:$0xff]  ;;  %v1693_v39 = vld [vmem:[#allocation4 + $0x20] sm:$0xff] }
 0x3ba   : > { %3349 = vpow2.f32 %v2155_v42 }
 0x3bb   : > { %1977 = vperm.xlu1 %3266, %v1891_v36   ;;  %v2136_v36 = vsub.f32 %v2120_v1, %v4579_v55  ;;  %3351 = vpow2.f32 %v2161_v5  ;;  %v1695_v1 = vld [vmem:[#allocation4 + $0x30] sm:$0xff] }
 0x3bc   : > { %1972 = vperm.xlu0 %3265, %v1890_v33   ;;  %v3336_v41 = vpop.eup %3335  ;;  %v2122_v33 = vld [vmem:[#allocation5 + $0xf8] sm:$0xff]  ;;  %3353 = vpow2.f32 %v2159_v44 }
 0x3bd   : > { %v2174_v50 = vmul.f32 %v3336_v41, %v4502_v63  ;;  %v2165_v4 = vmul.f32 1.442695, %v2136_v36  ;;  %v2138_v9 = vsub.f32 %v2122_v33, %v4589_v56  ;;  %v2167_v56 = vmul.f32 1.442695, %v2137_v23  ;;  %v1698_v36 = vld [vmem:[#allocation4 + $0x48] sm:$0xff]  ;;  %v1697_v41 = vld [vmem:[#allocation4 + $0x40] sm:$0xff] }
 0x3be   : > { %v3338_v17 = vpop.eup %3337 }
 0x3bf   : > { %1987 = vperm.xlu1 %3266, %v1893_v16   ;;  %v3340_v40 = vpop.eup %3339  ;;  %v2173_v55 = vmul.f32 %v3338_v17, %v4497_v13  ;;  %3355 = vpow2.f32 %v2165_v4  ;;  %v2169_v48 = vmul.f32 1.442695, %v2138_v9  ;;  %v1700_v17 = vld [vmem:[#allocation4 + $0x58] sm:$0xff] }
 0x3c0   : > { %1982 = vperm.xlu0 %3265, %v1892_v19   ;;  %v3342_v16 = vpop.eup %3341  ;;  %v2176_v26 = vmul.f32 %v3340_v40, %v4513_v54  ;;  %3357 = vpow2.f32 %v2163_v20  ;;  %v1701_v20 = vld [vmem:[#allocation4 + $0x60] sm:$0xff] }
 0x3c1   : > { %v3344_v15 = vpop.eup %3343  ;;  %v2175_v63 = vmul.f32 %v3342_v16, %v4519_v0  ;;  %3359 = vpow2.f32 %v2169_v48 }
 0x3c2   : > { %v3346_v21 = vpop.eup %3345  ;;  %v2178_v13 = vmul.f32 %v3344_v15, %v4525_v47  ;;  %3361 = vpow2.f32 %v2167_v56  ;;  %v1704_v15 = vld [vmem:[#allocation4 + $0x78] sm:$0xff]  ;;  %v1703_v56 = vld [vmem:[#allocation4 + $0x70] sm:$0xff] }
 0x3c3   : > { %1997 = vperm.xlu1 %3266, %v1895_v3   ;;  %v2177_v60 = vmul.f32 %v3346_v21, %v4531_v34 }
 0x3c4   : > { %1992 = vperm.xlu0 %3265, %v1894_v57  }
 0x3c5   : > { %v3348_v19 = vpop.eup %3347 }
 0x3c6   : > { %v2180_v54 = vmul.f32 %v3348_v19, %v4537_v22 }
 0x3c7   : > { %2007 = vperm.xlu1 %3266, %v1897_v31   ;;  %v3350_v29 = vpop.eup %3349  ;;  %v1694_v31 = vld [vmem:[#allocation4 + $0x28] sm:$0xff] }
 0x3c8   : > { %2002 = vperm.xlu0 %3265, %v1896_v62   ;;  %v3352_v53 = vpop.eup %3351  ;;  %v2179_v0 = vmul.f32 %v3350_v29, %v4543_v32 }
 0x3c9   : > { %v3354_v14 = vpop.eup %3353  ;;  %v2182_v43 = vmul.f32 %v3352_v53, %v4549_v52  ;;  %v2914_v53 = vld [vmem:[#allocation6 + $0x8] sm:$0xff]  }
 0x3ca   : > { %v2181_v47 = vmul.f32 %v3354_v14, %v4555_v58  ;;  %v1691_v58 = vld [vmem:[#allocation4 + $0x10] sm:$0xff] }
 0x3cb   : > { %2227 = vperm.xlu1 %3266, %v2172_v27  }
 0x3cc   : > { %2222 = vperm.xlu0 %3265, %v2171_v7   ;;  %v3356_v59 = vpop.eup %3355 }
 0x3cd   : > { %v3358_v3 = vpop.eup %3357  ;;  %v2184_v34 = vmul.f32 %v3356_v59, %v4561_v10  ;;  %v2850_v59 = vunpack.c.h.bf16 %v2914_v53 }
 0x3ce   : > { %v3360_v30 = vpop.eup %3359  ;;  %v2183_v22 = vmul.f32 %v3358_v3, %v4567_v12  ;;  %v2849_v3 = vunpack.c.l.bf16 %v2914_v53 }
 0x3cf   : > { %2237 = vperm.xlu1 %3266, %v2174_v50   ;;  %v3362_v18 = vpop.eup %3361  ;;  %v2186_v32 = vmul.f32 %v3360_v30, %v4571_v49 }
 0x3d0   : > { %2232 = vperm.xlu0 %3265, %v2173_v55   ;;  %v2185_v52 = vmul.f32 %v3362_v18, %v4573_v37  ;;  %v1702_v55 = vld [vmem:[#allocation4 + $0x68] sm:$0xff] }
 0x3d3   : > { %2247 = vperm.xlu1 %3266, %v2176_v26  }
 0x3d4   : > { %2242 = vperm.xlu0 %3265, %v2175_v63   ;;  %v2844_v63 = vld [vmem:[#allocation6] sm:$0xff]  }
 0x3d7   : > { %2257 = vperm.xlu1 %3266, %v2178_v13  }
 0x3d8   : > { %2252 = vperm.xlu0 %3265, %v2177_v60   ;;  %v2846_v60 = vunpack.c.h.bf16 %v2844_v63 }
 0x3db   : > { %2267 = vperm.xlu1 %3266, %v2180_v54   ;;  %v2845_v54 = vunpack.c.l.bf16 %v2844_v63 }
 0x3dc   : > { %2262 = vperm.xlu0 %3265, %v2179_v0  }
 0x3df   : > { %2277 = vperm.xlu1 %3266, %v2182_v43  }
 0x3e0   : > { %2272 = vperm.xlu0 %3265, %v2181_v47  }
 0x3e3   : > { %2287 = vperm.xlu1 %3266, %v2184_v34   ;;  %v2915_v34 = vld [vmem:[#allocation6 + $0x10] sm:$0xff]  }
 0x3e4   : > { %2282 = vperm.xlu0 %3265, %v2183_v22  }
 0x3e7   : > { %2297 = vperm.xlu1 %3266, %v2186_v32  }
 0x3e8   : > { %2292 = vperm.xlu0 %3265, %v2185_v52  }
 0x406   : > { %v1718_v10 = vpop.permute.xlu1 %1717 }
 0x407   : > { %v1787_v57 = vmul.f32 %v1718_v10, %v1691_v58  ;;  %v1708_v25 = vpop.permute.xlu0 %1707  ;;  %v2854_v58 = vunpack.c.h.bf16 %v2915_v34  ;;  %v2853_v10 = vunpack.c.l.bf16 %v2915_v34 }
 0x408   : > { %v1785_v12 = vmul.f32 %v1708_v25, %v1689_v24 }
 0x409   : > { %1804 = vst.msk [vmem:[%s3693_s24 + $0x10] sm:$0xff] %vm1801_vm3, %v1787_v57  ;;  %v2916_v57 = vld [vmem:[#allocation6 + $0x18] sm:$0xff]  }
 0x40a   : > { %1802 = vst.msk [vmem:[%s3693_s24] sm:$0xff] %vm1801_vm3, %v1785_v12  ;;  %v1723_v49 = vpop.permute.xlu1 %1722 }
 0x40b   : > { %v1788_v37 = vmul.f32 %v1723_v49, %v1692_v28  ;;  %v1713_v35 = vpop.permute.xlu0 %1712 }
 0x40c   : > { %v1786_v61 = vmul.f32 %v1713_v35, %v1690_v6 }
 0x40d   : > { %1805 = vst.msk [vmem:[%s3693_s24 + $0x18] sm:$0xff] %vm1801_vm3, %v1788_v37  ;;  %v2858_v37 = vunpack.c.h.bf16 %v2916_v57 }
 0x40e   : > { %1803 = vst.msk [vmem:[%s3693_s24 + $0x8] sm:$0xff] %vm1801_vm3, %v1786_v61  ;;  %v1733_v11 = vpop.permute.xlu1 %1732  ;;  %v2857_v61 = vunpack.c.l.bf16 %v2916_v57 }
 0x40f   : > { %v1790_v8 = vmul.f32 %v1733_v11, %v1694_v31  ;;  %v1728_v62 = vpop.permute.xlu0 %1727  ;;  %v2917_v31 = vld [vmem:[#allocation6 + $0x20] sm:$0xff]  }
 0x410   : > { %v1789_v42 = vmul.f32 %v1728_v62, %v1693_v39 }
 0x411   : > { %1807 = vst.msk [vmem:[%s3693_s24 + $0x28] sm:$0xff] %vm1801_vm3, %v1790_v8 }
 0x412   : > { %1806 = vst.msk [vmem:[%s3693_s24 + $0x20] sm:$0xff] %vm1801_vm3, %v1789_v42  ;;  %v1743_v2 = vpop.permute.xlu1 %1742 }
 0x413   : > { %v1792_v51 = vmul.f32 %v1743_v2, %v1696_v46  ;;  %v1738_v27 = vpop.permute.xlu0 %1737  ;;  %v2862_v46 = vunpack.c.h.bf16 %v2917_v31  ;;  %v2861_v2 = vunpack.c.l.bf16 %v2917_v31 }
 0x414   : > { %v1791_v5 = vmul.f32 %v1738_v27, %v1695_v1 }
 0x415   : > { %1809 = vst.msk [vmem:[%s3693_s24 + $0x38] sm:$0xff] %vm1801_vm3, %v1792_v51  ;;  %v2918_v51 = vld [vmem:[#allocation6 + $0x28] sm:$0xff]  }
 0x416   : > { %1808 = vst.msk [vmem:[%s3693_s24 + $0x30] sm:$0xff] %vm1801_vm3, %v1791_v5  ;;  %v1753_v7 = vpop.permute.xlu1 %1752 }
 0x417   : > { %v1794_v44 = vmul.f32 %v1753_v7, %v1698_v36  ;;  %v1748_v38 = vpop.permute.xlu0 %1747 }
 0x418   : > { %v1793_v33 = vmul.f32 %v1748_v38, %v1697_v41 }
 0x419   : > { %1811 = vst.msk [vmem:[%s3693_s24 + $0x48] sm:$0xff] %vm1801_vm3, %v1794_v44  ;;  %v2866_v44 = vunpack.c.h.bf16 %v2918_v51 }
 0x41a   : > { %1810 = vst.msk [vmem:[%s3693_s24 + $0x40] sm:$0xff] %vm1801_vm3, %v1793_v33  ;;  %v1763_v50 = vpop.permute.xlu1 %1762  ;;  %v2865_v33 = vunpack.c.l.bf16 %v2918_v51 }
 0x41b   : > { %v1796_v4 = vmul.f32 %v1763_v50, %v1700_v17  ;;  %v1758_v9 = vpop.permute.xlu0 %1757  ;;  %v2919_v17 = vld [vmem:[#allocation6 + $0x30] sm:$0xff]  }
 0x41c   : > { %v1795_v40 = vmul.f32 %v1758_v9, %v1699_v45 }
 0x41d   : > { %1813 = vst.msk [vmem:[%s3693_s24 + $0x58] sm:$0xff] %vm1801_vm3, %v1796_v4 }
 0x41e   : > { %1812 = vst.msk [vmem:[%s3693_s24 + $0x50] sm:$0xff] %vm1801_vm3, %v1795_v40  ;;  %v1773_v23 = vpop.permute.xlu1 %1772 }
 0x41f   : > { %v1798_v16 = vmul.f32 %v1773_v23, %v1702_v55  ;;  %v1768_v26 = vpop.permute.xlu0 %1767  ;;  %v2870_v55 = vunpack.c.h.bf16 %v2919_v17  ;;  %v2869_v23 = vunpack.c.l.bf16 %v2919_v17 }
 0x420   : > { %v1797_v48 = vmul.f32 %v1768_v26, %v1701_v20 }
 0x421   : > { %1815 = vst.msk [vmem:[%s3693_s24 + $0x68] sm:$0xff] %vm1801_vm3, %v1798_v16  ;;  %v2920_v16 = vld [vmem:[#allocation6 + $0x38] sm:$0xff]  }
 0x422   : > { %1814 = vst.msk [vmem:[%s3693_s24 + $0x60] sm:$0xff] %vm1801_vm3, %v1797_v48  ;;  %v1783_v21 = vpop.permute.xlu1 %1782 }
 0x423   : > { %v1800_v13 = vmul.f32 %v1783_v21, %v1704_v15  ;;  %v1778_v19 = vpop.permute.xlu0 %1777  ;;  %v2874_v21 = vunpack.c.h.bf16 %v2920_v16 }
 0x424   : > { %v1799_v29 = vmul.f32 %v1778_v19, %v1703_v56  ;;  %v2873_v19 = vunpack.c.l.bf16 %v2920_v16 }
 0x425   : > { %1817 = vst.msk [vmem:[%s3693_s24 + $0x78] sm:$0xff] %vm1801_vm3, %v1800_v13 }
 0x426   : > { %1816 = vst.msk [vmem:[%s3693_s24 + $0x70] sm:$0xff] %vm1801_vm3, %v1799_v29  ;;  %v1938_v0 = vpop.permute.xlu1 %1937 }
 0x427   : > { %v2011_v14 = vmul.f32 %v2846_v60, %v1938_v0  ;;  %v1933_v43 = vpop.permute.xlu0 %1932  ;;  %v2876_v60 = vld [vmem:[#allocation6 + $0x40] sm:$0xff]  }
 0x428   : > { %v2010_v47 = vmul.f32 %v2845_v54, %v1933_v43  ;;  %v2878_v43 = vunpack.c.h.bf16 %v2876_v60 }
 0x429   : > { %v2771_v30 = vpack.c.bf16 %v2011_v14, %v2011_v14 }
 0x42a   : > { %v2770_v22 = vpack.c.bf16 %v2010_v47, %v2010_v47  ;;  %v1948_v18 = vpop.permute.xlu1 %1947  ;;  %v2877_v47 = vunpack.c.l.bf16 %v2876_v60 }
 0x42b   : > { %2091 = vst [vmem:[%s3705_s30 + $0x8] sm:$0xf] %v2771_v30  ;;  %v2013_v32 = vmul.f32 %v2850_v59, %v1948_v18  ;;  %v1943_v52 = vpop.permute.xlu0 %1942 }
 0x42c   : > { %2090 = vst [vmem:[%s3705_s30] sm:$0xf] %v2770_v22  ;;  %v2012_v24 = vmul.f32 %v2849_v3, %v1943_v52  ;;  %v2921_v3 = vld [vmem:[#allocation6 + $0x48] sm:$0xff]  }
 0x42d   : > { %v2773_v25 = vpack.c.bf16 %v2013_v32, %v2013_v32  ;;  %v2882_v52 = vunpack.c.h.bf16 %v2921_v3 }
 0x42e   : > { %v2772_v12 = vpack.c.bf16 %v2012_v24, %v2012_v24  ;;  %v1958_v28 = vpop.permute.xlu1 %1957  ;;  %v2881_v24 = vunpack.c.l.bf16 %v2921_v3 }
 0x42f   : > { %2093 = vst [vmem:[%s3705_s30 + $0x18] sm:$0xf] %v2773_v25  ;;  %v2015_v6 = vmul.f32 %v2854_v58, %v1958_v28  ;;  %v1953_v49 = vpop.permute.xlu0 %1952 }
 0x430   : > { %2092 = vst [vmem:[%s3705_s30 + $0x10] sm:$0xf] %v2772_v12  ;;  %v2014_v35 = vmul.f32 %v2853_v10, %v1953_v49  ;;  %v2922_v10 = vld [vmem:[#allocation6 + $0x50] sm:$0xff]  }
 0x431   : > { %v2775_v39 = vpack.c.bf16 %v2015_v6, %v2015_v6  ;;  %v2886_v49 = vunpack.c.h.bf16 %v2922_v10 }
 0x432   : > { %v2774_v11 = vpack.c.bf16 %v2014_v35, %v2014_v35  ;;  %v1968_v8 = vpop.permute.xlu1 %1967  ;;  %v2885_v35 = vunpack.c.l.bf16 %v2922_v10 }
 0x433   : > { %2095 = vst [vmem:[%s3705_s30 + $0x28] sm:$0xf] %v2775_v39  ;;  %v2017_v62 = vmul.f32 %v2858_v37, %v1968_v8  ;;  %v1963_v42 = vpop.permute.xlu0 %1962 }
 0x434   : > { %2094 = vst [vmem:[%s3705_s30 + $0x20] sm:$0xf] %v2774_v11  ;;  %v2016_v1 = vmul.f32 %v2857_v61, %v1963_v42  ;;  %v2923_v61 = vld [vmem:[#allocation6 + $0x58] sm:$0xff]  }
 0x435   : > { %v2777_v27 = vpack.c.bf16 %v2017_v62, %v2017_v62  ;;  %v2890_v42 = vunpack.c.h.bf16 %v2923_v61 }
 0x436   : > { %v2776_v5 = vpack.c.bf16 %v2016_v1, %v2016_v1  ;;  %v1978_v36 = vpop.permute.xlu1 %1977  ;;  %v2889_v1 = vunpack.c.l.bf16 %v2923_v61 }
 0x437   : > { %2097 = vst [vmem:[%s3705_s30 + $0x38] sm:$0xf] %v2777_v27  ;;  %v2019_v41 = vmul.f32 %v2862_v46, %v1978_v36  ;;  %v1973_v7 = vpop.permute.xlu0 %1972 }
 0x438   : > { %2096 = vst [vmem:[%s3705_s30 + $0x30] sm:$0xf] %v2776_v5  ;;  %v2018_v38 = vmul.f32 %v2861_v2, %v1973_v7  ;;  %v2924_v2 = vld [vmem:[#allocation6 + $0x60] sm:$0xff]  }
 0x439   : > { %v2779_v45 = vpack.c.bf16 %v2019_v41, %v2019_v41  ;;  %v2894_v7 = vunpack.c.h.bf16 %v2924_v2 }
 0x43a   : > { %v2778_v50 = vpack.c.bf16 %v2018_v38, %v2018_v38  ;;  %v1988_v4 = vpop.permute.xlu1 %1987  ;;  %v2893_v38 = vunpack.c.l.bf16 %v2924_v2 }
 0x43b   : > { %2099 = vst [vmem:[%s3705_s30 + $0x48] sm:$0xf] %v2779_v45  ;;  %v2021_v9 = vmul.f32 %v2866_v44, %v1988_v4  ;;  %v1983_v40 = vpop.permute.xlu0 %1982 }
 0x43c   : > { %2098 = vst [vmem:[%s3705_s30 + $0x40] sm:$0xf] %v2778_v50  ;;  %v2020_v20 = vmul.f32 %v2865_v33, %v1983_v40  ;;  %v2925_v33 = vld [vmem:[#allocation6 + $0x68] sm:$0xff]  }
 0x43d   : > { %v2781_v26 = vpack.c.bf16 %v2021_v9, %v2021_v9  ;;  %v2898_v40 = vunpack.c.h.bf16 %v2925_v33 }
 0x43e   : > { %v2780_v48 = vpack.c.bf16 %v2020_v20, %v2020_v20  ;;  %v1998_v15 = vpop.permute.xlu1 %1997  ;;  %v2897_v20 = vunpack.c.l.bf16 %v2925_v33 }
 0x43f   : > { %2101 = vst [vmem:[%s3705_s30 + $0x58] sm:$0xf] %v2781_v26  ;;  %v2023_v63 = vmul.f32 %v2870_v55, %v1998_v15  ;;  %v1993_v56 = vpop.permute.xlu0 %1992 }
 0x440   : > { %2100 = vst [vmem:[%s3705_s30 + $0x50] sm:$0xf] %v2780_v48  ;;  %v2022_v13 = vmul.f32 %v2869_v23, %v1993_v56  ;;  %v2926_v23 = vld [vmem:[#allocation6 + $0x70] sm:$0xff]  }
 0x441   : > { %v2783_v29 = vpack.c.bf16 %v2023_v63, %v2023_v63  ;;  %v2902_v56 = vunpack.c.h.bf16 %v2926_v23 }
 0x442   : > { %v2782_v54 = vpack.c.bf16 %v2022_v13, %v2022_v13  ;;  %v2008_v53 = vpop.permute.xlu1 %2007  ;;  %v2901_v13 = vunpack.c.l.bf16 %v2926_v23 }
 0x443   : > { %2103 = vst [vmem:[%s3705_s30 + $0x68] sm:$0xf] %v2783_v29  ;;  %v2025_v0 = vmul.f32 %v2874_v21, %v2008_v53  ;;  %v2003_v14 = vpop.permute.xlu0 %2002 }
 0x444   : > { %2102 = vst [vmem:[%s3705_s30 + $0x60] sm:$0xf] %v2782_v54  ;;  %v2024_v59 = vmul.f32 %v2873_v19, %v2003_v14  ;;  %v2927_v19 = vld [vmem:[#allocation6 + $0x78] sm:$0xff]  }
 0x445   : > { %v2785_v34 = vpack.c.bf16 %v2025_v0, %v2025_v0  ;;  %v2906_v14 = vunpack.c.h.bf16 %v2927_v19 }
 0x446   : > { %v2784_v30 = vpack.c.bf16 %v2024_v59, %v2024_v59  ;;  %v2228_v22 = vpop.permute.xlu1 %2227  ;;  %v2905_v59 = vunpack.c.l.bf16 %v2927_v19 }
 0x447   : > { %2105 = vst [vmem:[%s3705_s30 + $0x78] sm:$0xf] %v2785_v34  ;;  %v2301_v18 = vmul.f32 %v2878_v43, %v2228_v22  ;;  %v2223_v32 = vpop.permute.xlu0 %2222 }
 0x448   : > { %2104 = vst [vmem:[%s3705_s30 + $0x70] sm:$0xf] %v2784_v30  ;;  %v2300_v58 = vmul.f32 %v2877_v47, %v2223_v32 }
 0x449   : > { %v2787_v57 = vpack.c.bf16 %v2301_v18, %v2301_v18 }
 0x44a   : > { %v2786_v25 = vpack.c.bf16 %v2300_v58, %v2300_v58  ;;  %v2238_v12 = vpop.permute.xlu1 %2237 }
 0x44b   : > { %2381 = vst [vmem:[%s3705_s30 + $0xc] sm:$0xf] %v2787_v57  ;;  %v2303_v28 = vmul.f32 %v2882_v52, %v2238_v12  ;;  %v2233_v6 = vpop.permute.xlu0 %2232 }
 0x44c   : > { %2380 = vst [vmem:[%s3705_s30 + $0x4] sm:$0xf] %v2786_v25  ;;  %v2302_v37 = vmul.f32 %v2881_v24, %v2233_v6 }
 0x44d   : > { %v2789_v31 = vpack.c.bf16 %v2303_v28, %v2303_v28 }
 0x44e   : > { %v2788_v39 = vpack.c.bf16 %v2302_v37, %v2302_v37  ;;  %v2248_v11 = vpop.permute.xlu1 %2247 }
 0x44f   : > { %2383 = vst [vmem:[%s3705_s30 + $0x1c] sm:$0xf] %v2789_v31  ;;  %v2305_v8 = vmul.f32 %v2886_v49, %v2248_v11  ;;  %v2243_v62 = vpop.permute.xlu0 %2242 }
 0x450   : > { %2382 = vst [vmem:[%s3705_s30 + $0x14] sm:$0xf] %v2788_v39  ;;  %v2304_v46 = vmul.f32 %v2885_v35, %v2243_v62 }
 0x451   : > { %v2791_v51 = vpack.c.bf16 %v2305_v8, %v2305_v8 }
 0x452   : > { %v2790_v27 = vpack.c.bf16 %v2304_v46, %v2304_v46  ;;  %v2258_v5 = vpop.permute.xlu1 %2257 }
 0x453   : > { %2385 = vst [vmem:[%s3705_s30 + $0x2c] sm:$0xf] %v2791_v51  ;;  %v2307_v36 = vmul.f32 %v2890_v42, %v2258_v5  ;;  %v2253_v41 = vpop.permute.xlu0 %2252 }
 0x454   : > { %2384 = vst [vmem:[%s3705_s30 + $0x24] sm:$0xf] %v2790_v27  ;;  %v2306_v44 = vmul.f32 %v2889_v1, %v2253_v41 }
 0x455   : > { %v2793_v17 = vpack.c.bf16 %v2307_v36, %v2307_v36 }
 0x456   : > { %v2792_v45 = vpack.c.bf16 %v2306_v44, %v2306_v44  ;;  %v2268_v50 = vpop.permute.xlu1 %2267 }
 0x457   : > { %2387 = vst [vmem:[%s3705_s30 + $0x3c] sm:$0xf] %v2793_v17  ;;  %v2309_v4 = vmul.f32 %v2894_v7, %v2268_v50  ;;  %v2263_v9 = vpop.permute.xlu0 %2262 }
 0x458   : > { %2386 = vst [vmem:[%s3705_s30 + $0x34] sm:$0xf] %v2792_v45  ;;  %v2308_v55 = vmul.f32 %v2893_v38, %v2263_v9 }
 0x459   : > { %v2795_v16 = vpack.c.bf16 %v2309_v4, %v2309_v4 }
 0x45a   : > { %v2794_v26 = vpack.c.bf16 %v2308_v55, %v2308_v55  ;;  %v2278_v48 = vpop.permute.xlu1 %2277 }
 0x45b   : > { %2389 = vst [vmem:[%s3705_s30 + $0x4c] sm:$0xf] %v2795_v16  ;;  %v2311_v15 = vmul.f32 %v2898_v40, %v2278_v48  ;;  %v2273_v63 = vpop.permute.xlu0 %2272 }
 0x45c   : > { %2388 = vst [vmem:[%s3705_s30 + $0x44] sm:$0xf] %v2794_v26  ;;  %v2310_v21 = vmul.f32 %v2897_v20, %v2273_v63 }
 0x45d   : > { %v2797_v60 = vpack.c.bf16 %v2311_v15, %v2311_v15 }
 0x45e   : > { %v2796_v29 = vpack.c.bf16 %v2310_v21, %v2310_v21  ;;  %v2288_v54 = vpop.permute.xlu1 %2287 }
 0x45f   : > { %2391 = vst [vmem:[%s3705_s30 + $0x5c] sm:$0xf] %v2797_v60  ;;  %v2313_v53 = vmul.f32 %v2902_v56, %v2288_v54  ;;  %v2283_v0 = vpop.permute.xlu0 %2282 }
 0x460   : > { %2390 = vst [vmem:[%s3705_s30 + $0x54] sm:$0xf] %v2796_v29  ;;  %v2312_v43 = vmul.f32 %v2901_v13, %v2283_v0 }
 0x461   : > { %v2799_v47 = vpack.c.bf16 %v2313_v53, %v2313_v53 }
 0x462   : > { %v2798_v3 = vpack.c.bf16 %v2312_v43, %v2312_v43  ;;  %v2298_v34 = vpop.permute.xlu1 %2297 }
 0x463   : > { %2393 = vst [vmem:[%s3705_s30 + $0x6c] sm:$0xf] %v2799_v47  ;;  %v2315_v30 = vmul.f32 %v2906_v14, %v2298_v34  ;;  %v2293_v22 = vpop.permute.xlu0 %2292 }
 0x464   : > { %2392 = vst [vmem:[%s3705_s30 + $0x64] sm:$0xf] %v2798_v3  ;;  %v2314_v18 = vmul.f32 %v2905_v59, %v2293_v22 }
 0x465   : > { %v2801_v32 = vpack.c.bf16 %v2315_v30, %v2315_v30 }
 0x466   : > { %v2800_v52 = vpack.c.bf16 %v2314_v18, %v2314_v18 }
 0x467   : > { %2395 = vst [vmem:[%s3705_s30 + $0x7c] sm:$0xf] %v2801_v32 }
 0x468   : > { %2394 = vst [vmem:[%s3705_s30 + $0x74] sm:$0xf] %v2800_v52 }
 0x469 PF: > { %s2802_s20 = sshll.u32 %s3475_s21, 5  ;;  %s2747_s24 = sshll.u32 %s3479_s22, 6 }
 0x46a   : > { %s2748_s10 = sshll.u32 %s3483_s23, 8  ;;  %s2427_s8 = sadd.s32 %s2802_s20, %s2747_s24 }
 0x46b   : > { %s2432_s5 = sshll.u32 %s3705_s30, 4  ;;  %s2429_s13 = sadd.s32 %s2748_s10, %s2427_s8  ;;  %s4709_s5 = int_to_ptr.vmem [resolvable:$true] %s2432_s5 }
 0x46c   : > { %s2749_s14 = sshll.u32 %s2429_s13, 6  ;;  %s4880_s12 = sld [smem:[#allocation37_spill]] }
 0x46d   : > { %s4881_s2 = sand.u32 1, %s3455_s16   ;;  %s3363_s21 = scalar_lea.vmem %s4709_s5, 2048 }
 0x46e   : > { %s4718_s15 = scalar_lea.sflag [#allocation9], %s4881_s2  ;;  %p3364_p1 = scmp.ne.s32.totalorder %s4709_s5, %s3363_s21 }
 0x46f   : > { %s3511_s22 = smov [#allocation8]  }
 0x470   : > { %p3365_p2 = pnand %p3364_p1, %p3635_p10  ;;  %s3367_s23 = sshll.u32 %s3511_s22, 4  ;;  %s3368_s23 = int_to_ptr.vmem [resolvable:$false] %s3367_s23 }
 0x471   : > { %s3369_s4 = scalar_lea.vmem %s3368_s23, 4096  ;;  %p3370_p4 = scmp.lt.s32.totalorder %s4709_s5, %s3368_s23 }
 0x472   : > { %s4714_s3 = scalar_lea.hbm %s4880_s12, %s2749_s14  ;;  %p3366_p3 = pneg %p3365_p2 }
 0x473   : > { %p3371_p5 = scmp.lt.s32.totalorder %s3369_s4, %s3363_s21 }
 0x475   : > { %p3372_p6 = por %p3371_p5, %p3370_p4 }
 0x477   : > { %p3373_p7 = pnand %p3372_p6, %p3366_p3 }
 0x479   : > { %3376 = shalt.err (!%p3373_p7)
}
 0x47a   : > { %s3377_s18 = scalar_lea.hbm %s4714_s3, 2048  ;;  %s3381_s0 = scalar_lea.hbm %s4880_s12, 32768 }
 0x47b   : > { %p3378_p8 = scmp.ne.s32.totalorder %s4714_s3, %s3377_s18  ;;  %p3382_p13 = scmp.lt.s32.totalorder %s4714_s3, %s4880_s12 }
 0x47c   : > { %p3383_p0 = scmp.lt.s32.totalorder %s3381_s0, %s3377_s18 }
 0x47d   : > { %p3379_p9 = pnand %p3378_p8, %p3635_p10 }
 0x47e   : > { %p3384_p1 = por %p3383_p0, %p3382_p13 }
 0x47f   : > { %p3380_p11 = pneg %p3379_p9 }
 0x481   : > { %p3385_p2 = pnand %p3384_p1, %p3380_p11 }
 0x483   : > { %3388 = shalt.err (!%p3385_p2)
}
 0x484   : > { %s3512_s25 = smov 128   ;;  %s3513_s26 = smov 8  }
 0x485   : > { %3022 = dma.vmem_to_hbm [thread:$0]  (%p3635_p10), %s4709_s5, 2048, %s4714_s3, %s4718_s15, %s3512_s25, %s3512_s25, %s3513_s26  }
 0x486 PF: > { %s4882_s27 = sld [smem:[#allocation11_spill]]  ;;  %p3028_p3 = scmp.ge.s32.totalorder %s3503_s28, 2 }
 0x488   : > { %p3025_p4 = pnand %p3028_p3, %p3639_p12 }
 0x48a   : > { %p3026_p5 = pneg %p3025_p4 }
 0x48c   : > { %s2463_s29 = sand.u32 1, %s4882_s27  }
 0x48d   : > { %s2464_s20 = scalar_lea.sflag [#allocation9], %s2463_s29 }
 0x48e   : > { %3446 = dma.done.wait (%p3026_p5), %s2464_s20, 2048  }
 0x48f   : > { %3448 = vsyncadd (%p3026_p5), %s2464_s20, 4294965248  ;;  %s18_s28 = sadd.s32 1, %s3503_s28   ;;  %s4884_s17 = sld [smem:[#allocation12_spill]] }
 0x490   : > { %p4746_p6 = scmp.ge.s32.totalorder %s18_s28, 34   ;;  %s4885_s10 = sld [smem:[#allocation24_spill]] }
 0x491   : > { %s4886_s18 = sld [smem:[#allocation13_spill]]  ;;  %s4897_s15 = smov %s3455_s16 }
 0x492   : > { %s4887_s19 = sld [smem:[#allocation23_spill]] }
 0x493   : > { %s4888_s20 = sld [smem:[#allocation14_spill]] }
 0x494   : > { %s4889_s21 = sld [smem:[#allocation15_spill]] }
 0x495   : > { %s4890_s22 = sld [smem:[#allocation16_spill]]  ;;  %s4898_s16 = smov %s4884_s17 }
 0x496   : > { %s4891_s23 = sld [smem:[#allocation17_spill]]  ;;  %s4899_s17 = smov %s4885_s10 }
 0x497   : > { %s4892_s11 = sld [smem:[#allocation18_spill]] }
 0x498   : > { %s4893_s25 = sld [smem:[#allocation19_spill]] }
 0x499   : > { %s4894_s26 = sld [smem:[#allocation20_spill]]  ;;  %17 = sbr.rel (!%p4746_p6) target bundleno = 14 (0xe), region = 153 }
 0x49a   : > { %s4895_s27 = sld [smem:[#allocation22_spill]] }
 0x49d   : > { %s4900_s24 = smov %s4892_s11 }
 0x49e   :  { %2469 = vsyncpa [#allocation9], 1 }
 0x49f   :  { %2471 = vsyncpa [#allocation9 + $0x1], 1 }

</bundles_post_ra>
